<compile_context>
chip_gen: v5e
topology: v5e:2x2
jax: 0.10.0
libtpu: 0.0.40
codegen_flags: <defaults>
</compile_context>

<pallas_src>
import math
import jax
import jax.numpy as jnp
from jax.experimental import pallas as pl
from jax.experimental.pallas import tpu as pltpu

# ---------------- small synthetic ViT config (same forward structure) ----------------
BATCH = 2
IMG = 16            # spatial size
PATCH = 8           # patch size
CHANNELS = 3
HIDDEN = 32
NUM_HEADS = 2
HEAD_DIM = HIDDEN // NUM_HEADS
MLP_DIM = 4 * HIDDEN
NUM_LAYERS = 2
NUM_PATCHES = (IMG // PATCH) ** 2       # 4
SEQ = NUM_PATCHES + 1                   # 5 = CLS + patches
SEQ_PAD = 8                             # sublane-tile aligned working sequence
CPP = CHANNELS * PATCH * PATCH          # 192 = flattened patch size
OUT_PAD = 128                           # lane-dense output slab width
EPS = 1e-12                             # ViT layer_norm_eps
NEG_INF = -1e30


def _layernorm(v, g, b):
    mu = jnp.mean(v, axis=-1, keepdims=True)
    var = jnp.mean((v - mu) ** 2, axis=-1, keepdims=True)
    return (v - mu) * jax.lax.rsqrt(var + EPS) * g + b


# --------------------------- fused Pallas kernel (one image / grid step) --------------
def vit_kernel(patches_ref, addtab_ref, pw_ref,
               ln1g_ref, ln1b_ref, wqkv_ref, bqkv_ref, wo_ref, bo_ref,
               ln2g_ref, ln2b_ref, wi_ref, bi_ref, wout_ref, bout_ref,
               lnf_g_ref, lnf_b_ref,
               out_ref):
    # Patch embedding + fused (CLS | pos | patch-bias) table add. All rows are
    # tile-aligned (SEQ_PAD = 8); pad rows stay zero here and never affect real rows.
    x = (jnp.dot(patches_ref[...], pw_ref[...],
                 preferred_element_type=jnp.float32) + addtab_ref[...])     # (8, H) f32

    # -inf bias on the SEQ_PAD-SEQ pad *keys*; pad query rows are dropped by the wrapper.
    key_bias = jnp.where(
        jax.lax.broadcasted_iota(jnp.int32, (1, SEQ_PAD), 1) < SEQ, 0.0, NEG_INF)

    scale = 1.0 / math.sqrt(HEAD_DIM)
    for l in range(NUM_LAYERS):                         # static unroll, weights resident
        # ---- MHSA (pre-LN) ----
        h = _layernorm(x, ln1g_ref[l], ln1b_ref[l])
        qkv = (jnp.dot(h.astype(jnp.bfloat16), wqkv_ref[l],
                       preferred_element_type=jnp.float32) + bqkv_ref[l])   # (8, 3H)
        ctx_heads = []
        for hd in range(NUM_HEADS):                     # 2 heads, static unroll
            c0 = hd * HEAD_DIM
            qh = qkv[:, c0:c0 + HEAD_DIM].astype(jnp.bfloat16)
            kh = qkv[:, HIDDEN + c0:HIDDEN + c0 + HEAD_DIM].astype(jnp.bfloat16)
            vh = qkv[:, 2 * HIDDEN + c0:2 * HIDDEN + c0 + HEAD_DIM].astype(jnp.bfloat16)
            # contract last dims directly — no explicit K transpose (no XLU vxpose)
            s = jax.lax.dot_general(qh, kh, (((1,), (1,)), ((), ())),
                                    preferred_element_type=jnp.float32) * scale
            s = s + key_bias
            s = s - jnp.max(s, axis=-1, keepdims=True)            # stable softmax (f32)
            e = jnp.exp(s)
            p = e * pl.reciprocal(jnp.sum(e, axis=-1, keepdims=True), approx=False)
            ctx_heads.append(jnp.dot(p.astype(jnp.bfloat16), vh,
                                     preferred_element_type=jnp.float32))
        ctx = jnp.concatenate(ctx_heads, axis=-1)                  # (8, H) full-width
        attn = (jnp.dot(ctx.astype(jnp.bfloat16), wo_ref[l],
                        preferred_element_type=jnp.float32) + bo_ref[l])
        x = x + attn                                               # residual 1 (f32)

        # ---- MLP (pre-LN) ----
        h2 = _layernorm(x, ln2g_ref[l], ln2b_ref[l])
        # TODO(synk): HF ViT uses exact erf-GELU; tanh-approx GELU used here (EUP path,
        # robust Mosaic lowering) — small numeric deviation from the reference.
        inter = jax.nn.gelu(
            jnp.dot(h2.astype(jnp.bfloat16), wi_ref[l],
                    preferred_element_type=jnp.float32) + bi_ref[l],
            approximate=True)
        mlp = (jnp.dot(inter.astype(jnp.bfloat16), wout_ref[l],
                       preferred_element_type=jnp.float32) + bout_ref[l])
        x = x + mlp                                                # residual 2

    final = _layernorm(x, lnf_g_ref[...], lnf_b_ref[...])
    # Lane-dense (8, 128) unmasked store; wrapper slices [:, :SEQ, :HIDDEN].
    out_ref[...] = jnp.concatenate(
        [final, jnp.zeros((SEQ_PAD, OUT_PAD - HIDDEN), jnp.float32)],
        axis=-1).astype(out_ref.dtype)


# ------------------------------ wrapper ---------------------------------
@jax.jit
def vit_forward(img, params):
    """img: (B, C, H, W) NCHW float32 -> last_hidden_state (B, SEQ, HIDDEN)."""
    B = img.shape[0]
    hp = IMG // PATCH
    # Non-overlapping patch extraction == Conv2d(kernel=P, stride=P) unrolled to a matmul.
    patches = img.reshape(B, CHANNELS, hp, PATCH, hp, PATCH)
    patches = patches.transpose(0, 2, 4, 1, 3, 5).reshape(B, NUM_PATCHES, CPP)
    # Pad each image's patch rows to SEQ_PAD: row 0 = CLS slot (zero), rows SEQ..7 pad.
    patches_pad = jnp.zeros((B, SEQ_PAD, CPP), jnp.float32)
    patches_pad = patches_pad.at[:, 1:SEQ, :].set(patches).astype(jnp.bfloat16)

    # Token-assembly table (shared across images): row 0 = cls + pos[0],
    # rows 1..SEQ-1 = pos[i] + patch_bias, pad rows = 0.  Kernel does one aligned add.
    addtab = jnp.zeros((SEQ_PAD, HIDDEN), jnp.float32)
    addtab = addtab.at[0, :].set(params["cls"][0] + params["pos"][0])
    addtab = addtab.at[1:SEQ, :].set(params["pos"][1:SEQ] + params["patch_b"])

    L = params["layers"]
    bf = lambda a: a.astype(jnp.bfloat16)     # bf16 MXU operands (accumulate in f32)

    inputs = (
        patches_pad, addtab, bf(params["patch_w"]),
        L["ln1_g"], L["ln1_b"], bf(L["wqkv"]), L["bqkv"], bf(L["wo"]), L["bo"],
        L["ln2_g"], L["ln2_b"], bf(L["wi"]), L["bi"], bf(L["wout"]), L["bout"],
        params["ln_g"], params["ln_b"],
    )

    def const_spec(arr):     # full array, VMEM-resident across all grid steps
        return pl.BlockSpec(arr.shape, lambda b, _n=arr.ndim: (0,) * _n)

    in_specs = [pl.BlockSpec((None, SEQ_PAD, CPP), lambda b: (b, 0, 0))]
    in_specs += [const_spec(a) for a in inputs[1:]]

    out3d = pl.pallas_call(
        vit_kernel,
        grid=(B,),
        in_specs=in_specs,
        out_specs=pl.BlockSpec((None, SEQ_PAD, OUT_PAD), lambda b: (b, 0, 0)),
        out_shape=jax.ShapeDtypeStruct((B, SEQ_PAD, OUT_PAD), jnp.float32),
        compiler_params=pltpu.CompilerParams(dimension_semantics=("parallel",)),
    )(*inputs)
    return out3d[:, :SEQ, :HIDDEN]


# ---------------------- deterministic parameter init ---------------------
def init_params(key):
    def nrm(k, shape, scale=0.02):
        return scale * jax.random.normal(k, shape, jnp.float32)

    keys = jax.random.split(key, 4 + NUM_LAYERS)
    params = {
        "patch_w": nrm(keys[0], (CPP, HIDDEN)),
        "patch_b": jnp.zeros((1, HIDDEN), jnp.float32),
        "cls": nrm(keys[1], (1, HIDDEN)),
        "pos": nrm(keys[2], (SEQ, HIDDEN)),
        "ln_g": jnp.ones((1, HIDDEN), jnp.float32),
        "ln_b": jnp.zeros((1, HIDDEN), jnp.float32),
    }
    # Stacked (L, ...) per-layer weights; QKV fused into one (H, 3H) projection.
    wqkv, bqkv, wo, bo, wi, bi, wout, bout = [], [], [], [], [], [], [], []
    for l in range(NUM_LAYERS):
        lk = jax.random.split(keys[4 + l], 6)
        wqkv.append(jnp.concatenate(
            [nrm(lk[0], (HIDDEN, HIDDEN)), nrm(lk[1], (HIDDEN, HIDDEN)),
             nrm(lk[2], (HIDDEN, HIDDEN))], axis=1))
        bqkv.append(jnp.zeros((1, 3 * HIDDEN), jnp.float32))
        wo.append(nrm(lk[3], (HIDDEN, HIDDEN)))
        bo.append(jnp.zeros((1, HIDDEN), jnp.float32))
        wi.append(nrm(lk[4], (HIDDEN, MLP_DIM)))
        bi.append(jnp.zeros((1, MLP_DIM), jnp.float32))
        wout.append(nrm(lk[5], (MLP_DIM, HIDDEN)))
        bout.append(jnp.zeros((1, HIDDEN), jnp.float32))
    params["layers"] = {
        "ln1_g": jnp.ones((NUM_LAYERS, 1, HIDDEN), jnp.float32),
        "ln1_b": jnp.zeros((NUM_LAYERS, 1, HIDDEN), jnp.float32),
        "wqkv": jnp.stack(wqkv), "bqkv": jnp.stack(bqkv),
        "wo": jnp.stack(wo), "bo": jnp.stack(bo),
        "ln2_g": jnp.ones((NUM_LAYERS, 1, HIDDEN), jnp.float32),
        "ln2_b": jnp.zeros((NUM_LAYERS, 1, HIDDEN), jnp.float32),
        "wi": jnp.stack(wi), "bi": jnp.stack(bi),
        "wout": jnp.stack(wout), "bout": jnp.stack(bout),
    }
    return params


if __name__ == "__main__":
    key = jax.random.PRNGKey(0)
    kp, kimg = jax.random.split(key)
    params = init_params(kp)
    # TODO(synk): real ViT-base uses pretrained google/vit-base-patch16-224 weights
    # (hidden=768, 12 layers, 224x224); this script uses synthetic deterministic weights.
    img = jax.random.normal(kimg, (BATCH, CHANNELS, IMG, IMG), jnp.float32)  # NCHW

    out = vit_forward(img, params)
    out = jax.block_until_ready(out)
    assert out.shape == (BATCH, SEQ, HIDDEN), out.shape
    assert bool(jnp.all(jnp.isfinite(out)))
    print("KERNEL_OK")
</pallas_src>

<mosaic_0001>
module attributes {stable_mosaic.version = 11 : i64} {
  func.func @vit_kernel(%arg0: i32, %arg1: memref<1x8x192xbf16, #tpu.memory_space<vmem>>, %arg2: memref<8x32xf32, #tpu.memory_space<vmem>>, %arg3: memref<192x32xbf16, #tpu.memory_space<vmem>>, %arg4: memref<2x1x32xf32, #tpu.memory_space<vmem>>, %arg5: memref<2x1x32xf32, #tpu.memory_space<vmem>>, %arg6: memref<2x32x96xbf16, #tpu.memory_space<vmem>>, %arg7: memref<2x1x96xf32, #tpu.memory_space<vmem>>, %arg8: memref<2x32x32xbf16, #tpu.memory_space<vmem>>, %arg9: memref<2x1x32xf32, #tpu.memory_space<vmem>>, %arg10: memref<2x1x32xf32, #tpu.memory_space<vmem>>, %arg11: memref<2x1x32xf32, #tpu.memory_space<vmem>>, %arg12: memref<2x32x128xbf16, #tpu.memory_space<vmem>>, %arg13: memref<2x1x128xf32, #tpu.memory_space<vmem>>, %arg14: memref<2x128x32xbf16, #tpu.memory_space<vmem>>, %arg15: memref<2x1x32xf32, #tpu.memory_space<vmem>>, %arg16: memref<1x32xf32, #tpu.memory_space<vmem>>, %arg17: memref<1x32xf32, #tpu.memory_space<vmem>>, %arg18: memref<1x8x128xf32, #tpu.memory_space<vmem>>) attributes {dimension_semantics = [#tpu.dimension_semantics<parallel>], iteration_bounds = array<i64: 2>, scalar_prefetch = 0 : i64, scratch_operands = 0 : i64, tpu.core_type = #tpu.core_type<tc>, window_params = [{transform_indices = @transform_0, window_bounds = array<i64: 1, 8, 192>}, {pipeline_mode = #tpu.pipeline_mode<synchronous>, transform_indices = @transform_1, window_bounds = array<i64: 8, 32>}, {pipeline_mode = #tpu.pipeline_mode<synchronous>, transform_indices = @transform_2, window_bounds = array<i64: 192, 32>}, {pipeline_mode = #tpu.pipeline_mode<synchronous>, transform_indices = @transform_3, window_bounds = array<i64: 2, 1, 32>}, {pipeline_mode = #tpu.pipeline_mode<synchronous>, transform_indices = @transform_4, window_bounds = array<i64: 2, 1, 32>}, {pipeline_mode = #tpu.pipeline_mode<synchronous>, transform_indices = @transform_5, window_bounds = array<i64: 2, 32, 96>}, {pipeline_mode = #tpu.pipeline_mode<synchronous>, transform_indices = @transform_6, window_bounds = array<i64: 2, 1, 96>}, {pipeline_mode = #tpu.pipeline_mode<synchronous>, transform_indices = @transform_7, window_bounds = array<i64: 2, 32, 32>}, {pipeline_mode = #tpu.pipeline_mode<synchronous>, transform_indices = @transform_8, window_bounds = array<i64: 2, 1, 32>}, {pipeline_mode = #tpu.pipeline_mode<synchronous>, transform_indices = @transform_9, window_bounds = array<i64: 2, 1, 32>}, {pipeline_mode = #tpu.pipeline_mode<synchronous>, transform_indices = @transform_10, window_bounds = array<i64: 2, 1, 32>}, {pipeline_mode = #tpu.pipeline_mode<synchronous>, transform_indices = @transform_11, window_bounds = array<i64: 2, 32, 128>}, {pipeline_mode = #tpu.pipeline_mode<synchronous>, transform_indices = @transform_12, window_bounds = array<i64: 2, 1, 128>}, {pipeline_mode = #tpu.pipeline_mode<synchronous>, transform_indices = @transform_13, window_bounds = array<i64: 2, 128, 32>}, {pipeline_mode = #tpu.pipeline_mode<synchronous>, transform_indices = @transform_14, window_bounds = array<i64: 2, 1, 32>}, {pipeline_mode = #tpu.pipeline_mode<synchronous>, transform_indices = @transform_15, window_bounds = array<i64: 1, 32>}, {pipeline_mode = #tpu.pipeline_mode<synchronous>, transform_indices = @transform_16, window_bounds = array<i64: 1, 32>}, {transform_indices = @transform_17, window_bounds = array<i64: 1, 8, 128>}]} {
    %c0 = arith.constant 0 : index
    %c0_0 = arith.constant 0 : index
    %c0_1 = arith.constant 0 : index
    %0 = vector.load %arg1[%c0, %c0_0, %c0_1] : memref<1x8x192xbf16, #tpu.memory_space<vmem>>, vector<1x8x192xbf16>
    %1 = vector.shape_cast %0 : vector<1x8x192xbf16> to vector<8x192xbf16>
    %c0_2 = arith.constant 0 : index
    %c0_3 = arith.constant 0 : index
    %2 = vector.load %arg3[%c0_2, %c0_3] : memref<192x32xbf16, #tpu.memory_space<vmem>>, vector<192x32xbf16>
    %cst = arith.constant dense<0.000000e+00> : vector<8x32xf32>
    %3 = tpu.matmul %1, %2, %cst {dimension_numbers = #tpu.dot_dimension_numbers<[1], [0], [0], [1], [0, 0, 1, 1], [], []>} : vector<8x192xbf16>, vector<192x32xbf16>, vector<8x32xf32> -> vector<8x32xf32>
    %c0_4 = arith.constant 0 : index
    %c0_5 = arith.constant 0 : index
    %4 = vector.load %arg2[%c0_4, %c0_5] : memref<8x32xf32, #tpu.memory_space<vmem>>, vector<8x32xf32>
    %5 = arith.addf %3, %4 : vector<8x32xf32>
    %6 = tpu.iota {dimensions = array<i32: 1>} : vector<1x8xi32>
    %c5_i32 = arith.constant 5 : i32
    %7 = vector.broadcast %c5_i32 : i32 to vector<1x8xi32>
    %8 = arith.cmpi slt, %6, %7 : vector<1x8xi32>
    %cst_6 = arith.constant 0.000000e+00 : f32
    %cst_7 = arith.constant -1.000000e+30 : f32
    %9 = vector.broadcast %cst_6 : f32 to vector<1x8xf32>
    %10 = vector.broadcast %cst_7 : f32 to vector<1x8xf32>
    %11 = arith.select %8, %9, %10 : vector<1x8xi1>, vector<1x8xf32>
    %c0_8 = arith.constant 0 : index
    %c0_9 = arith.constant 0 : index
    %c0_10 = arith.constant 0 : index
    %12 = vector.load %arg4[%c0_8, %c0_9, %c0_10] : memref<2x1x32xf32, #tpu.memory_space<vmem>>, vector<1x1x32xf32>
    %13 = vector.shape_cast %12 : vector<1x1x32xf32> to vector<1x32xf32>
    %c0_11 = arith.constant 0 : index
    %c0_12 = arith.constant 0 : index
    %c0_13 = arith.constant 0 : index
    %14 = vector.load %arg5[%c0_11, %c0_12, %c0_13] : memref<2x1x32xf32, #tpu.memory_space<vmem>>, vector<1x1x32xf32>
    %15 = vector.shape_cast %14 : vector<1x1x32xf32> to vector<1x32xf32>
    %cst_14 = arith.constant dense<0.000000e+00> : vector<8xf32>
    %16 = vector.multi_reduction <add>, %5, %cst_14 [1] : vector<8x32xf32> to vector<8xf32>
    %17 = vector.shape_cast %16 : vector<8xf32> to vector<8x1xf32>
    %cst_15 = arith.constant 3.200000e+01 : f32
    %18 = vector.broadcast %cst_15 : f32 to vector<8x1xf32>
    %19 = arith.divf %17, %18 : vector<8x1xf32>
    %20 = vector.broadcast %19 : vector<8x1xf32> to vector<8x32xf32>
    %21 = arith.subf %5, %20 : vector<8x32xf32>
    %22 = arith.mulf %21, %21 : vector<8x32xf32>
    %cst_16 = arith.constant dense<0.000000e+00> : vector<8xf32>
    %23 = vector.multi_reduction <add>, %22, %cst_16 [1] : vector<8x32xf32> to vector<8xf32>
    %24 = vector.shape_cast %23 : vector<8xf32> to vector<8x1xf32>
    %cst_17 = arith.constant 3.200000e+01 : f32
    %25 = vector.broadcast %cst_17 : f32 to vector<8x1xf32>
    %26 = arith.divf %24, %25 : vector<8x1xf32>
    %27 = vector.broadcast %19 : vector<8x1xf32> to vector<8x32xf32>
    %28 = arith.subf %5, %27 : vector<8x32xf32>
    %cst_18 = arith.constant 9.99999996E-13 : f32
    %29 = vector.broadcast %cst_18 : f32 to vector<8x1xf32>
    %30 = arith.addf %26, %29 : vector<8x1xf32>
    %31 = math.rsqrt %30 : vector<8x1xf32>
    %32 = vector.broadcast %31 : vector<8x1xf32> to vector<8x32xf32>
    %33 = arith.mulf %28, %32 : vector<8x32xf32>
    %34 = vector.broadcast %13 : vector<1x32xf32> to vector<8x32xf32>
    %35 = arith.mulf %33, %34 : vector<8x32xf32>
    %36 = vector.broadcast %15 : vector<1x32xf32> to vector<8x32xf32>
    %37 = arith.addf %35, %36 : vector<8x32xf32>
    %38 = arith.truncf %37 : vector<8x32xf32> to vector<8x32xbf16>
    %c0_19 = arith.constant 0 : index
    %c0_20 = arith.constant 0 : index
    %c0_21 = arith.constant 0 : index
    %39 = vector.load %arg6[%c0_19, %c0_20, %c0_21] : memref<2x32x96xbf16, #tpu.memory_space<vmem>>, vector<1x32x96xbf16>
    %40 = vector.shape_cast %39 : vector<1x32x96xbf16> to vector<32x96xbf16>
    %cst_22 = arith.constant dense<0.000000e+00> : vector<8x96xf32>
    %41 = tpu.matmul %38, %40, %cst_22 {dimension_numbers = #tpu.dot_dimension_numbers<[1], [0], [0], [1], [0, 0, 1, 1], [], []>} : vector<8x32xbf16>, vector<32x96xbf16>, vector<8x96xf32> -> vector<8x96xf32>
    %c0_23 = arith.constant 0 : index
    %c0_24 = arith.constant 0 : index
    %c0_25 = arith.constant 0 : index
    %42 = vector.load %arg7[%c0_23, %c0_24, %c0_25] : memref<2x1x96xf32, #tpu.memory_space<vmem>>, vector<1x1x96xf32>
    %43 = vector.shape_cast %42 : vector<1x1x96xf32> to vector<1x96xf32>
    %44 = vector.broadcast %43 : vector<1x96xf32> to vector<8x96xf32>
    %45 = arith.addf %41, %44 : vector<8x96xf32>
    %46 = vector.extract_strided_slice %45 {offsets = [0, 0], sizes = [8, 16], strides = [1, 1]} : vector<8x96xf32> to vector<8x16xf32>
    %47 = arith.truncf %46 : vector<8x16xf32> to vector<8x16xbf16>
    %48 = vector.extract_strided_slice %45 {offsets = [0, 32], sizes = [8, 16], strides = [1, 1]} : vector<8x96xf32> to vector<8x16xf32>
    %49 = arith.truncf %48 : vector<8x16xf32> to vector<8x16xbf16>
    %50 = vector.extract_strided_slice %45 {offsets = [0, 64], sizes = [8, 16], strides = [1, 1]} : vector<8x96xf32> to vector<8x16xf32>
    %51 = arith.truncf %50 : vector<8x16xf32> to vector<8x16xbf16>
    %cst_26 = arith.constant dense<0.000000e+00> : vector<8x8xf32>
    %52 = tpu.matmul %47, %49, %cst_26 {dimension_numbers = #tpu.dot_dimension_numbers<[1], [1], [0], [0], [0, 0, 1, 0], [], []>} : vector<8x16xbf16>, vector<8x16xbf16>, vector<8x8xf32> -> vector<8x8xf32>
    %cst_27 = arith.constant 2.500000e-01 : f32
    %53 = vector.broadcast %cst_27 : f32 to vector<8x8xf32>
    %54 = arith.mulf %52, %53 : vector<8x8xf32>
    %55 = vector.broadcast %11 : vector<1x8xf32> to vector<8x8xf32>
    %56 = arith.addf %54, %55 : vector<8x8xf32>
    %cst_28 = arith.constant dense<0xFF800000> : vector<8xf32>
    %57 = vector.multi_reduction <maximumf>, %56, %cst_28 [1] : vector<8x8xf32> to vector<8xf32>
    %58 = vector.shape_cast %57 : vector<8xf32> to vector<8x1xf32>
    %59 = vector.broadcast %58 : vector<8x1xf32> to vector<8x8xf32>
    %60 = arith.subf %56, %59 : vector<8x8xf32>
    %61 = math.exp %60 : vector<8x8xf32>
    %cst_29 = arith.constant dense<0.000000e+00> : vector<8xf32>
    %62 = vector.multi_reduction <add>, %61, %cst_29 [1] : vector<8x8xf32> to vector<8xf32>
    %63 = vector.shape_cast %62 : vector<8xf32> to vector<8x1xf32>
    %64 = tpu.reciprocal %63 : vector<8x1xf32> -> vector<8x1xf32>
    %65 = vector.broadcast %64 : vector<8x1xf32> to vector<8x8xf32>
    %66 = arith.mulf %61, %65 : vector<8x8xf32>
    %67 = arith.truncf %66 : vector<8x8xf32> to vector<8x8xbf16>
    %cst_30 = arith.constant dense<0.000000e+00> : vector<8x16xf32>
    %68 = tpu.matmul %67, %51, %cst_30 {dimension_numbers = #tpu.dot_dimension_numbers<[1], [0], [0], [1], [0, 0, 1, 1], [], []>} : vector<8x8xbf16>, vector<8x16xbf16>, vector<8x16xf32> -> vector<8x16xf32>
    %69 = vector.extract_strided_slice %45 {offsets = [0, 16], sizes = [8, 16], strides = [1, 1]} : vector<8x96xf32> to vector<8x16xf32>
    %70 = arith.truncf %69 : vector<8x16xf32> to vector<8x16xbf16>
    %71 = vector.extract_strided_slice %45 {offsets = [0, 48], sizes = [8, 16], strides = [1, 1]} : vector<8x96xf32> to vector<8x16xf32>
    %72 = arith.truncf %71 : vector<8x16xf32> to vector<8x16xbf16>
    %73 = vector.extract_strided_slice %45 {offsets = [0, 80], sizes = [8, 16], strides = [1, 1]} : vector<8x96xf32> to vector<8x16xf32>
    %74 = arith.truncf %73 : vector<8x16xf32> to vector<8x16xbf16>
    %cst_31 = arith.constant dense<0.000000e+00> : vector<8x8xf32>
    %75 = tpu.matmul %70, %72, %cst_31 {dimension_numbers = #tpu.dot_dimension_numbers<[1], [1], [0], [0], [0, 0, 1, 0], [], []>} : vector<8x16xbf16>, vector<8x16xbf16>, vector<8x8xf32> -> vector<8x8xf32>
    %cst_32 = arith.constant 2.500000e-01 : f32
    %76 = vector.broadcast %cst_32 : f32 to vector<8x8xf32>
    %77 = arith.mulf %75, %76 : vector<8x8xf32>
    %78 = vector.broadcast %11 : vector<1x8xf32> to vector<8x8xf32>
    %79 = arith.addf %77, %78 : vector<8x8xf32>
    %cst_33 = arith.constant dense<0xFF800000> : vector<8xf32>
    %80 = vector.multi_reduction <maximumf>, %79, %cst_33 [1] : vector<8x8xf32> to vector<8xf32>
    %81 = vector.shape_cast %80 : vector<8xf32> to vector<8x1xf32>
    %82 = vector.broadcast %81 : vector<8x1xf32> to vector<8x8xf32>
    %83 = arith.subf %79, %82 : vector<8x8xf32>
    %84 = math.exp %83 : vector<8x8xf32>
    %cst_34 = arith.constant dense<0.000000e+00> : vector<8xf32>
    %85 = vector.multi_reduction <add>, %84, %cst_34 [1] : vector<8x8xf32> to vector<8xf32>
    %86 = vector.shape_cast %85 : vector<8xf32> to vector<8x1xf32>
    %87 = tpu.reciprocal %86 : vector<8x1xf32> -> vector<8x1xf32>
    %88 = vector.broadcast %87 : vector<8x1xf32> to vector<8x8xf32>
    %89 = arith.mulf %84, %88 : vector<8x8xf32>
    %90 = arith.truncf %89 : vector<8x8xf32> to vector<8x8xbf16>
    %cst_35 = arith.constant dense<0.000000e+00> : vector<8x16xf32>
    %91 = tpu.matmul %90, %74, %cst_35 {dimension_numbers = #tpu.dot_dimension_numbers<[1], [0], [0], [1], [0, 0, 1, 1], [], []>} : vector<8x8xbf16>, vector<8x16xbf16>, vector<8x16xf32> -> vector<8x16xf32>
    %92 = tpu.concatenate %68, %91 in 1 : vector<8x16xf32>, vector<8x16xf32> -> vector<8x32xf32>
    %93 = arith.truncf %92 : vector<8x32xf32> to vector<8x32xbf16>
    %c0_36 = arith.constant 0 : index
    %c0_37 = arith.constant 0 : index
    %c0_38 = arith.constant 0 : index
    %94 = vector.load %arg8[%c0_36, %c0_37, %c0_38] : memref<2x32x32xbf16, #tpu.memory_space<vmem>>, vector<1x32x32xbf16>
    %95 = vector.shape_cast %94 : vector<1x32x32xbf16> to vector<32x32xbf16>
    %cst_39 = arith.constant dense<0.000000e+00> : vector<8x32xf32>
    %96 = tpu.matmul %93, %95, %cst_39 {dimension_numbers = #tpu.dot_dimension_numbers<[1], [0], [0], [1], [0, 0, 1, 1], [], []>} : vector<8x32xbf16>, vector<32x32xbf16>, vector<8x32xf32> -> vector<8x32xf32>
    %c0_40 = arith.constant 0 : index
    %c0_41 = arith.constant 0 : index
    %c0_42 = arith.constant 0 : index
    %97 = vector.load %arg9[%c0_40, %c0_41, %c0_42] : memref<2x1x32xf32, #tpu.memory_space<vmem>>, vector<1x1x32xf32>
    %98 = vector.shape_cast %97 : vector<1x1x32xf32> to vector<1x32xf32>
    %99 = vector.broadcast %98 : vector<1x32xf32> to vector<8x32xf32>
    %100 = arith.addf %96, %99 : vector<8x32xf32>
    %101 = arith.addf %5, %100 : vector<8x32xf32>
    %c0_43 = arith.constant 0 : index
    %c0_44 = arith.constant 0 : index
    %c0_45 = arith.constant 0 : index
    %102 = vector.load %arg10[%c0_43, %c0_44, %c0_45] : memref<2x1x32xf32, #tpu.memory_space<vmem>>, vector<1x1x32xf32>
    %103 = vector.shape_cast %102 : vector<1x1x32xf32> to vector<1x32xf32>
    %c0_46 = arith.constant 0 : index
    %c0_47 = arith.constant 0 : index
    %c0_48 = arith.constant 0 : index
    %104 = vector.load %arg11[%c0_46, %c0_47, %c0_48] : memref<2x1x32xf32, #tpu.memory_space<vmem>>, vector<1x1x32xf32>
    %105 = vector.shape_cast %104 : vector<1x1x32xf32> to vector<1x32xf32>
    %cst_49 = arith.constant dense<0.000000e+00> : vector<8xf32>
    %106 = vector.multi_reduction <add>, %101, %cst_49 [1] : vector<8x32xf32> to vector<8xf32>
    %107 = vector.shape_cast %106 : vector<8xf32> to vector<8x1xf32>
    %cst_50 = arith.constant 3.200000e+01 : f32
    %108 = vector.broadcast %cst_50 : f32 to vector<8x1xf32>
    %109 = arith.divf %107, %108 : vector<8x1xf32>
    %110 = vector.broadcast %109 : vector<8x1xf32> to vector<8x32xf32>
    %111 = arith.subf %101, %110 : vector<8x32xf32>
    %112 = arith.mulf %111, %111 : vector<8x32xf32>
    %cst_51 = arith.constant dense<0.000000e+00> : vector<8xf32>
    %113 = vector.multi_reduction <add>, %112, %cst_51 [1] : vector<8x32xf32> to vector<8xf32>
    %114 = vector.shape_cast %113 : vector<8xf32> to vector<8x1xf32>
    %cst_52 = arith.constant 3.200000e+01 : f32
    %115 = vector.broadcast %cst_52 : f32 to vector<8x1xf32>
    %116 = arith.divf %114, %115 : vector<8x1xf32>
    %117 = vector.broadcast %109 : vector<8x1xf32> to vector<8x32xf32>
    %118 = arith.subf %101, %117 : vector<8x32xf32>
    %cst_53 = arith.constant 9.99999996E-13 : f32
    %119 = vector.broadcast %cst_53 : f32 to vector<8x1xf32>
    %120 = arith.addf %116, %119 : vector<8x1xf32>
    %121 = math.rsqrt %120 : vector<8x1xf32>
    %122 = vector.broadcast %121 : vector<8x1xf32> to vector<8x32xf32>
    %123 = arith.mulf %118, %122 : vector<8x32xf32>
    %124 = vector.broadcast %103 : vector<1x32xf32> to vector<8x32xf32>
    %125 = arith.mulf %123, %124 : vector<8x32xf32>
    %126 = vector.broadcast %105 : vector<1x32xf32> to vector<8x32xf32>
    %127 = arith.addf %125, %126 : vector<8x32xf32>
    %128 = arith.truncf %127 : vector<8x32xf32> to vector<8x32xbf16>
    %c0_54 = arith.constant 0 : index
    %c0_55 = arith.constant 0 : index
    %c0_56 = arith.constant 0 : index
    %129 = vector.load %arg12[%c0_54, %c0_55, %c0_56] : memref<2x32x128xbf16, #tpu.memory_space<vmem>>, vector<1x32x128xbf16>
    %130 = vector.shape_cast %129 : vector<1x32x128xbf16> to vector<32x128xbf16>
    %cst_57 = arith.constant dense<0.000000e+00> : vector<8x128xf32>
    %131 = tpu.matmul %128, %130, %cst_57 {dimension_numbers = #tpu.dot_dimension_numbers<[1], [0], [0], [1], [0, 0, 1, 1], [], []>} : vector<8x32xbf16>, vector<32x128xbf16>, vector<8x128xf32> -> vector<8x128xf32>
    %c0_58 = arith.constant 0 : index
    %c0_59 = arith.constant 0 : index
    %c0_60 = arith.constant 0 : index
    %132 = vector.load %arg13[%c0_58, %c0_59, %c0_60] : memref<2x1x128xf32, #tpu.memory_space<vmem>>, vector<1x1x128xf32>
    %133 = vector.shape_cast %132 : vector<1x1x128xf32> to vector<1x128xf32>
    %134 = vector.broadcast %133 : vector<1x128xf32> to vector<8x128xf32>
    %135 = arith.addf %131, %134 : vector<8x128xf32>
    %136 = arith.mulf %135, %135 : vector<8x128xf32>
    %137 = arith.mulf %135, %136 : vector<8x128xf32>
    %cst_61 = arith.constant 4.471500e-02 : f32
    %138 = vector.broadcast %cst_61 : f32 to vector<8x128xf32>
    %139 = arith.mulf %138, %137 : vector<8x128xf32>
    %140 = arith.addf %135, %139 : vector<8x128xf32>
    %cst_62 = arith.constant 0.797884583 : f32
    %141 = vector.broadcast %cst_62 : f32 to vector<8x128xf32>
    %142 = arith.mulf %141, %140 : vector<8x128xf32>
    %143 = math.tanh %142 : vector<8x128xf32>
    %cst_63 = arith.constant 1.000000e+00 : f32
    %144 = vector.broadcast %cst_63 : f32 to vector<8x128xf32>
    %145 = arith.addf %144, %143 : vector<8x128xf32>
    %cst_64 = arith.constant 5.000000e-01 : f32
    %146 = vector.broadcast %cst_64 : f32 to vector<8x128xf32>
    %147 = arith.mulf %146, %145 : vector<8x128xf32>
    %148 = arith.mulf %135, %147 : vector<8x128xf32>
    %149 = arith.truncf %148 : vector<8x128xf32> to vector<8x128xbf16>
    %c0_65 = arith.constant 0 : index
    %c0_66 = arith.constant 0 : index
    %c0_67 = arith.constant 0 : index
    %150 = vector.load %arg14[%c0_65, %c0_66, %c0_67] : memref<2x128x32xbf16, #tpu.memory_space<vmem>>, vector<1x128x32xbf16>
    %151 = vector.shape_cast %150 : vector<1x128x32xbf16> to vector<128x32xbf16>
    %cst_68 = arith.constant dense<0.000000e+00> : vector<8x32xf32>
    %152 = tpu.matmul %149, %151, %cst_68 {dimension_numbers = #tpu.dot_dimension_numbers<[1], [0], [0], [1], [0, 0, 1, 1], [], []>} : vector<8x128xbf16>, vector<128x32xbf16>, vector<8x32xf32> -> vector<8x32xf32>
    %c0_69 = arith.constant 0 : index
    %c0_70 = arith.constant 0 : index
    %c0_71 = arith.constant 0 : index
    %153 = vector.load %arg15[%c0_69, %c0_70, %c0_71] : memref<2x1x32xf32, #tpu.memory_space<vmem>>, vector<1x1x32xf32>
    %154 = vector.shape_cast %153 : vector<1x1x32xf32> to vector<1x32xf32>
    %155 = vector.broadcast %154 : vector<1x32xf32> to vector<8x32xf32>
    %156 = arith.addf %152, %155 : vector<8x32xf32>
    %157 = arith.addf %101, %156 : vector<8x32xf32>
    %c1 = arith.constant 1 : index
    %c0_72 = arith.constant 0 : index
    %c0_73 = arith.constant 0 : index
    %158 = vector.load %arg4[%c1, %c0_72, %c0_73] : memref<2x1x32xf32, #tpu.memory_space<vmem>>, vector<1x1x32xf32>
    %159 = vector.shape_cast %158 : vector<1x1x32xf32> to vector<1x32xf32>
    %c1_74 = arith.constant 1 : index
    %c0_75 = arith.constant 0 : index
    %c0_76 = arith.constant 0 : index
    %160 = vector.load %arg5[%c1_74, %c0_75, %c0_76] : memref<2x1x32xf32, #tpu.memory_space<vmem>>, vector<1x1x32xf32>
    %161 = vector.shape_cast %160 : vector<1x1x32xf32> to vector<1x32xf32>
    %cst_77 = arith.constant dense<0.000000e+00> : vector<8xf32>
    %162 = vector.multi_reduction <add>, %157, %cst_77 [1] : vector<8x32xf32> to vector<8xf32>
    %163 = vector.shape_cast %162 : vector<8xf32> to vector<8x1xf32>
    %cst_78 = arith.constant 3.200000e+01 : f32
    %164 = vector.broadcast %cst_78 : f32 to vector<8x1xf32>
    %165 = arith.divf %163, %164 : vector<8x1xf32>
    %166 = vector.broadcast %165 : vector<8x1xf32> to vector<8x32xf32>
    %167 = arith.subf %157, %166 : vector<8x32xf32>
    %168 = arith.mulf %167, %167 : vector<8x32xf32>
    %cst_79 = arith.constant dense<0.000000e+00> : vector<8xf32>
    %169 = vector.multi_reduction <add>, %168, %cst_79 [1] : vector<8x32xf32> to vector<8xf32>
    %170 = vector.shape_cast %169 : vector<8xf32> to vector<8x1xf32>
    %cst_80 = arith.constant 3.200000e+01 : f32
    %171 = vector.broadcast %cst_80 : f32 to vector<8x1xf32>
    %172 = arith.divf %170, %171 : vector<8x1xf32>
    %173 = vector.broadcast %165 : vector<8x1xf32> to vector<8x32xf32>
    %174 = arith.subf %157, %173 : vector<8x32xf32>
    %cst_81 = arith.constant 9.99999996E-13 : f32
    %175 = vector.broadcast %cst_81 : f32 to vector<8x1xf32>
    %176 = arith.addf %172, %175 : vector<8x1xf32>
    %177 = math.rsqrt %176 : vector<8x1xf32>
    %178 = vector.broadcast %177 : vector<8x1xf32> to vector<8x32xf32>
    %179 = arith.mulf %174, %178 : vector<8x32xf32>
    %180 = vector.broadcast %159 : vector<1x32xf32> to vector<8x32xf32>
    %181 = arith.mulf %179, %180 : vector<8x32xf32>
    %182 = vector.broadcast %161 : vector<1x32xf32> to vector<8x32xf32>
    %183 = arith.addf %181, %182 : vector<8x32xf32>
    %184 = arith.truncf %183 : vector<8x32xf32> to vector<8x32xbf16>
    %c1_82 = arith.constant 1 : index
    %c0_83 = arith.constant 0 : index
    %c0_84 = arith.constant 0 : index
    %185 = vector.load %arg6[%c1_82, %c0_83, %c0_84] : memref<2x32x96xbf16, #tpu.memory_space<vmem>>, vector<1x32x96xbf16>
    %186 = vector.shape_cast %185 : vector<1x32x96xbf16> to vector<32x96xbf16>
    %cst_85 = arith.constant dense<0.000000e+00> : vector<8x96xf32>
    %187 = tpu.matmul %184, %186, %cst_85 {dimension_numbers = #tpu.dot_dimension_numbers<[1], [0], [0], [1], [0, 0, 1, 1], [], []>} : vector<8x32xbf16>, vector<32x96xbf16>, vector<8x96xf32> -> vector<8x96xf32>
    %c1_86 = arith.constant 1 : index
    %c0_87 = arith.constant 0 : index
    %c0_88 = arith.constant 0 : index
    %188 = vector.load %arg7[%c1_86, %c0_87, %c0_88] : memref<2x1x96xf32, #tpu.memory_space<vmem>>, vector<1x1x96xf32>
    %189 = vector.shape_cast %188 : vector<1x1x96xf32> to vector<1x96xf32>
    %190 = vector.broadcast %189 : vector<1x96xf32> to vector<8x96xf32>
    %191 = arith.addf %187, %190 : vector<8x96xf32>
    %192 = vector.extract_strided_slice %191 {offsets = [0, 0], sizes = [8, 16], strides = [1, 1]} : vector<8x96xf32> to vector<8x16xf32>
    %193 = arith.truncf %192 : vector<8x16xf32> to vector<8x16xbf16>
    %194 = vector.extract_strided_slice %191 {offsets = [0, 32], sizes = [8, 16], strides = [1, 1]} : vector<8x96xf32> to vector<8x16xf32>
    %195 = arith.truncf %194 : vector<8x16xf32> to vector<8x16xbf16>
    %196 = vector.extract_strided_slice %191 {offsets = [0, 64], sizes = [8, 16], strides = [1, 1]} : vector<8x96xf32> to vector<8x16xf32>
    %197 = arith.truncf %196 : vector<8x16xf32> to vector<8x16xbf16>
    %cst_89 = arith.constant dense<0.000000e+00> : vector<8x8xf32>
    %198 = tpu.matmul %193, %195, %cst_89 {dimension_numbers = #tpu.dot_dimension_numbers<[1], [1], [0], [0], [0, 0, 1, 0], [], []>} : vector<8x16xbf16>, vector<8x16xbf16>, vector<8x8xf32> -> vector<8x8xf32>
    %cst_90 = arith.constant 2.500000e-01 : f32
    %199 = vector.broadcast %cst_90 : f32 to vector<8x8xf32>
    %200 = arith.mulf %198, %199 : vector<8x8xf32>
    %201 = vector.broadcast %11 : vector<1x8xf32> to vector<8x8xf32>
    %202 = arith.addf %200, %201 : vector<8x8xf32>
    %cst_91 = arith.constant dense<0xFF800000> : vector<8xf32>
    %203 = vector.multi_reduction <maximumf>, %202, %cst_91 [1] : vector<8x8xf32> to vector<8xf32>
    %204 = vector.shape_cast %203 : vector<8xf32> to vector<8x1xf32>
    %205 = vector.broadcast %204 : vector<8x1xf32> to vector<8x8xf32>
    %206 = arith.subf %202, %205 : vector<8x8xf32>
    %207 = math.exp %206 : vector<8x8xf32>
    %cst_92 = arith.constant dense<0.000000e+00> : vector<8xf32>
    %208 = vector.multi_reduction <add>, %207, %cst_92 [1] : vector<8x8xf32> to vector<8xf32>
    %209 = vector.shape_cast %208 : vector<8xf32> to vector<8x1xf32>
    %210 = tpu.reciprocal %209 : vector<8x1xf32> -> vector<8x1xf32>
    %211 = vector.broadcast %210 : vector<8x1xf32> to vector<8x8xf32>
    %212 = arith.mulf %207, %211 : vector<8x8xf32>
    %213 = arith.truncf %212 : vector<8x8xf32> to vector<8x8xbf16>
    %cst_93 = arith.constant dense<0.000000e+00> : vector<8x16xf32>
    %214 = tpu.matmul %213, %197, %cst_93 {dimension_numbers = #tpu.dot_dimension_numbers<[1], [0], [0], [1], [0, 0, 1, 1], [], []>} : vector<8x8xbf16>, vector<8x16xbf16>, vector<8x16xf32> -> vector<8x16xf32>
    %215 = vector.extract_strided_slice %191 {offsets = [0, 16], sizes = [8, 16], strides = [1, 1]} : vector<8x96xf32> to vector<8x16xf32>
    %216 = arith.truncf %215 : vector<8x16xf32> to vector<8x16xbf16>
    %217 = vector.extract_strided_slice %191 {offsets = [0, 48], sizes = [8, 16], strides = [1, 1]} : vector<8x96xf32> to vector<8x16xf32>
    %218 = arith.truncf %217 : vector<8x16xf32> to vector<8x16xbf16>
    %219 = vector.extract_strided_slice %191 {offsets = [0, 80], sizes = [8, 16], strides = [1, 1]} : vector<8x96xf32> to vector<8x16xf32>
    %220 = arith.truncf %219 : vector<8x16xf32> to vector<8x16xbf16>
    %cst_94 = arith.constant dense<0.000000e+00> : vector<8x8xf32>
    %221 = tpu.matmul %216, %218, %cst_94 {dimension_numbers = #tpu.dot_dimension_numbers<[1], [1], [0], [0], [0, 0, 1, 0], [], []>} : vector<8x16xbf16>, vector<8x16xbf16>, vector<8x8xf32> -> vector<8x8xf32>
    %cst_95 = arith.constant 2.500000e-01 : f32
    %222 = vector.broadcast %cst_95 : f32 to vector<8x8xf32>
    %223 = arith.mulf %221, %222 : vector<8x8xf32>
    %224 = vector.broadcast %11 : vector<1x8xf32> to vector<8x8xf32>
    %225 = arith.addf %223, %224 : vector<8x8xf32>
    %cst_96 = arith.constant dense<0xFF800000> : vector<8xf32>
    %226 = vector.multi_reduction <maximumf>, %225, %cst_96 [1] : vector<8x8xf32> to vector<8xf32>
    %227 = vector.shape_cast %226 : vector<8xf32> to vector<8x1xf32>
    %228 = vector.broadcast %227 : vector<8x1xf32> to vector<8x8xf32>
    %229 = arith.subf %225, %228 : vector<8x8xf32>
    %230 = math.exp %229 : vector<8x8xf32>
    %cst_97 = arith.constant dense<0.000000e+00> : vector<8xf32>
    %231 = vector.multi_reduction <add>, %230, %cst_97 [1] : vector<8x8xf32> to vector<8xf32>
    %232 = vector.shape_cast %231 : vector<8xf32> to vector<8x1xf32>
    %233 = tpu.reciprocal %232 : vector<8x1xf32> -> vector<8x1xf32>
    %234 = vector.broadcast %233 : vector<8x1xf32> to vector<8x8xf32>
    %235 = arith.mulf %230, %234 : vector<8x8xf32>
    %236 = arith.truncf %235 : vector<8x8xf32> to vector<8x8xbf16>
    %cst_98 = arith.constant dense<0.000000e+00> : vector<8x16xf32>
    %237 = tpu.matmul %236, %220, %cst_98 {dimension_numbers = #tpu.dot_dimension_numbers<[1], [0], [0], [1], [0, 0, 1, 1], [], []>} : vector<8x8xbf16>, vector<8x16xbf16>, vector<8x16xf32> -> vector<8x16xf32>
    %238 = tpu.concatenate %214, %237 in 1 : vector<8x16xf32>, vector<8x16xf32> -> vector<8x32xf32>
    %239 = arith.truncf %238 : vector<8x32xf32> to vector<8x32xbf16>
    %c1_99 = arith.constant 1 : index
    %c0_100 = arith.constant 0 : index
    %c0_101 = arith.constant 0 : index
    %240 = vector.load %arg8[%c1_99, %c0_100, %c0_101] : memref<2x32x32xbf16, #tpu.memory_space<vmem>>, vector<1x32x32xbf16>
    %241 = vector.shape_cast %240 : vector<1x32x32xbf16> to vector<32x32xbf16>
    %cst_102 = arith.constant dense<0.000000e+00> : vector<8x32xf32>
    %242 = tpu.matmul %239, %241, %cst_102 {dimension_numbers = #tpu.dot_dimension_numbers<[1], [0], [0], [1], [0, 0, 1, 1], [], []>} : vector<8x32xbf16>, vector<32x32xbf16>, vector<8x32xf32> -> vector<8x32xf32>
    %c1_103 = arith.constant 1 : index
    %c0_104 = arith.constant 0 : index
    %c0_105 = arith.constant 0 : index
    %243 = vector.load %arg9[%c1_103, %c0_104, %c0_105] : memref<2x1x32xf32, #tpu.memory_space<vmem>>, vector<1x1x32xf32>
    %244 = vector.shape_cast %243 : vector<1x1x32xf32> to vector<1x32xf32>
    %245 = vector.broadcast %244 : vector<1x32xf32> to vector<8x32xf32>
    %246 = arith.addf %242, %245 : vector<8x32xf32>
    %247 = arith.addf %157, %246 : vector<8x32xf32>
    %c1_106 = arith.constant 1 : index
    %c0_107 = arith.constant 0 : index
    %c0_108 = arith.constant 0 : index
    %248 = vector.load %arg10[%c1_106, %c0_107, %c0_108] : memref<2x1x32xf32, #tpu.memory_space<vmem>>, vector<1x1x32xf32>
    %249 = vector.shape_cast %248 : vector<1x1x32xf32> to vector<1x32xf32>
    %c1_109 = arith.constant 1 : index
    %c0_110 = arith.constant 0 : index
    %c0_111 = arith.constant 0 : index
    %250 = vector.load %arg11[%c1_109, %c0_110, %c0_111] : memref<2x1x32xf32, #tpu.memory_space<vmem>>, vector<1x1x32xf32>
    %251 = vector.shape_cast %250 : vector<1x1x32xf32> to vector<1x32xf32>
    %cst_112 = arith.constant dense<0.000000e+00> : vector<8xf32>
    %252 = vector.multi_reduction <add>, %247, %cst_112 [1] : vector<8x32xf32> to vector<8xf32>
    %253 = vector.shape_cast %252 : vector<8xf32> to vector<8x1xf32>
    %cst_113 = arith.constant 3.200000e+01 : f32
    %254 = vector.broadcast %cst_113 : f32 to vector<8x1xf32>
    %255 = arith.divf %253, %254 : vector<8x1xf32>
    %256 = vector.broadcast %255 : vector<8x1xf32> to vector<8x32xf32>
    %257 = arith.subf %247, %256 : vector<8x32xf32>
    %258 = arith.mulf %257, %257 : vector<8x32xf32>
    %cst_114 = arith.constant dense<0.000000e+00> : vector<8xf32>
    %259 = vector.multi_reduction <add>, %258, %cst_114 [1] : vector<8x32xf32> to vector<8xf32>
    %260 = vector.shape_cast %259 : vector<8xf32> to vector<8x1xf32>
    %cst_115 = arith.constant 3.200000e+01 : f32
    %261 = vector.broadcast %cst_115 : f32 to vector<8x1xf32>
    %262 = arith.divf %260, %261 : vector<8x1xf32>
    %263 = vector.broadcast %255 : vector<8x1xf32> to vector<8x32xf32>
    %264 = arith.subf %247, %263 : vector<8x32xf32>
    %cst_116 = arith.constant 9.99999996E-13 : f32
    %265 = vector.broadcast %cst_116 : f32 to vector<8x1xf32>
    %266 = arith.addf %262, %265 : vector<8x1xf32>
    %267 = math.rsqrt %266 : vector<8x1xf32>
    %268 = vector.broadcast %267 : vector<8x1xf32> to vector<8x32xf32>
    %269 = arith.mulf %264, %268 : vector<8x32xf32>
    %270 = vector.broadcast %249 : vector<1x32xf32> to vector<8x32xf32>
    %271 = arith.mulf %269, %270 : vector<8x32xf32>
    %272 = vector.broadcast %251 : vector<1x32xf32> to vector<8x32xf32>
    %273 = arith.addf %271, %272 : vector<8x32xf32>
    %274 = arith.truncf %273 : vector<8x32xf32> to vector<8x32xbf16>
    %c1_117 = arith.constant 1 : index
    %c0_118 = arith.constant 0 : index
    %c0_119 = arith.constant 0 : index
    %275 = vector.load %arg12[%c1_117, %c0_118, %c0_119] : memref<2x32x128xbf16, #tpu.memory_space<vmem>>, vector<1x32x128xbf16>
    %276 = vector.shape_cast %275 : vector<1x32x128xbf16> to vector<32x128xbf16>
    %cst_120 = arith.constant dense<0.000000e+00> : vector<8x128xf32>
    %277 = tpu.matmul %274, %276, %cst_120 {dimension_numbers = #tpu.dot_dimension_numbers<[1], [0], [0], [1], [0, 0, 1, 1], [], []>} : vector<8x32xbf16>, vector<32x128xbf16>, vector<8x128xf32> -> vector<8x128xf32>
    %c1_121 = arith.constant 1 : index
    %c0_122 = arith.constant 0 : index
    %c0_123 = arith.constant 0 : index
    %278 = vector.load %arg13[%c1_121, %c0_122, %c0_123] : memref<2x1x128xf32, #tpu.memory_space<vmem>>, vector<1x1x128xf32>
    %279 = vector.shape_cast %278 : vector<1x1x128xf32> to vector<1x128xf32>
    %280 = vector.broadcast %279 : vector<1x128xf32> to vector<8x128xf32>
    %281 = arith.addf %277, %280 : vector<8x128xf32>
    %282 = arith.mulf %281, %281 : vector<8x128xf32>
    %283 = arith.mulf %281, %282 : vector<8x128xf32>
    %cst_124 = arith.constant 4.471500e-02 : f32
    %284 = vector.broadcast %cst_124 : f32 to vector<8x128xf32>
    %285 = arith.mulf %284, %283 : vector<8x128xf32>
    %286 = arith.addf %281, %285 : vector<8x128xf32>
    %cst_125 = arith.constant 0.797884583 : f32
    %287 = vector.broadcast %cst_125 : f32 to vector<8x128xf32>
    %288 = arith.mulf %287, %286 : vector<8x128xf32>
    %289 = math.tanh %288 : vector<8x128xf32>
    %cst_126 = arith.constant 1.000000e+00 : f32
    %290 = vector.broadcast %cst_126 : f32 to vector<8x128xf32>
    %291 = arith.addf %290, %289 : vector<8x128xf32>
    %cst_127 = arith.constant 5.000000e-01 : f32
    %292 = vector.broadcast %cst_127 : f32 to vector<8x128xf32>
    %293 = arith.mulf %292, %291 : vector<8x128xf32>
    %294 = arith.mulf %281, %293 : vector<8x128xf32>
    %295 = arith.truncf %294 : vector<8x128xf32> to vector<8x128xbf16>
    %c1_128 = arith.constant 1 : index
    %c0_129 = arith.constant 0 : index
    %c0_130 = arith.constant 0 : index
    %296 = vector.load %arg14[%c1_128, %c0_129, %c0_130] : memref<2x128x32xbf16, #tpu.memory_space<vmem>>, vector<1x128x32xbf16>
    %297 = vector.shape_cast %296 : vector<1x128x32xbf16> to vector<128x32xbf16>
    %cst_131 = arith.constant dense<0.000000e+00> : vector<8x32xf32>
    %298 = tpu.matmul %295, %297, %cst_131 {dimension_numbers = #tpu.dot_dimension_numbers<[1], [0], [0], [1], [0, 0, 1, 1], [], []>} : vector<8x128xbf16>, vector<128x32xbf16>, vector<8x32xf32> -> vector<8x32xf32>
    %c1_132 = arith.constant 1 : index
    %c0_133 = arith.constant 0 : index
    %c0_134 = arith.constant 0 : index
    %299 = vector.load %arg15[%c1_132, %c0_133, %c0_134] : memref<2x1x32xf32, #tpu.memory_space<vmem>>, vector<1x1x32xf32>
    %300 = vector.shape_cast %299 : vector<1x1x32xf32> to vector<1x32xf32>
    %301 = vector.broadcast %300 : vector<1x32xf32> to vector<8x32xf32>
    %302 = arith.addf %298, %301 : vector<8x32xf32>
    %303 = arith.addf %247, %302 : vector<8x32xf32>
    %c0_135 = arith.constant 0 : index
    %c0_136 = arith.constant 0 : index
    %304 = vector.load %arg16[%c0_135, %c0_136] : memref<1x32xf32, #tpu.memory_space<vmem>>, vector<1x32xf32>
    %c0_137 = arith.constant 0 : index
    %c0_138 = arith.constant 0 : index
    %305 = vector.load %arg17[%c0_137, %c0_138] : memref<1x32xf32, #tpu.memory_space<vmem>>, vector<1x32xf32>
    %cst_139 = arith.constant dense<0.000000e+00> : vector<8xf32>
    %306 = vector.multi_reduction <add>, %303, %cst_139 [1] : vector<8x32xf32> to vector<8xf32>
    %307 = vector.shape_cast %306 : vector<8xf32> to vector<8x1xf32>
    %cst_140 = arith.constant 3.200000e+01 : f32
    %308 = vector.broadcast %cst_140 : f32 to vector<8x1xf32>
    %309 = arith.divf %307, %308 : vector<8x1xf32>
    %310 = vector.broadcast %309 : vector<8x1xf32> to vector<8x32xf32>
    %311 = arith.subf %303, %310 : vector<8x32xf32>
    %312 = arith.mulf %311, %311 : vector<8x32xf32>
    %cst_141 = arith.constant dense<0.000000e+00> : vector<8xf32>
    %313 = vector.multi_reduction <add>, %312, %cst_141 [1] : vector<8x32xf32> to vector<8xf32>
    %314 = vector.shape_cast %313 : vector<8xf32> to vector<8x1xf32>
    %cst_142 = arith.constant 3.200000e+01 : f32
    %315 = vector.broadcast %cst_142 : f32 to vector<8x1xf32>
    %316 = arith.divf %314, %315 : vector<8x1xf32>
    %317 = vector.broadcast %309 : vector<8x1xf32> to vector<8x32xf32>
    %318 = arith.subf %303, %317 : vector<8x32xf32>
    %cst_143 = arith.constant 9.99999996E-13 : f32
    %319 = vector.broadcast %cst_143 : f32 to vector<8x1xf32>
    %320 = arith.addf %316, %319 : vector<8x1xf32>
    %321 = math.rsqrt %320 : vector<8x1xf32>
    %322 = vector.broadcast %321 : vector<8x1xf32> to vector<8x32xf32>
    %323 = arith.mulf %318, %322 : vector<8x32xf32>
    %324 = vector.broadcast %304 : vector<1x32xf32> to vector<8x32xf32>
    %325 = arith.mulf %323, %324 : vector<8x32xf32>
    %326 = vector.broadcast %305 : vector<1x32xf32> to vector<8x32xf32>
    %327 = arith.addf %325, %326 : vector<8x32xf32>
    %cst_144 = arith.constant 0.000000e+00 : f32
    %328 = vector.broadcast %cst_144 : f32 to vector<8x96xf32>
    %329 = tpu.concatenate %327, %328 in 1 : vector<8x32xf32>, vector<8x96xf32> -> vector<8x128xf32>
    %c0_145 = arith.constant 0 : index
    %c0_146 = arith.constant 0 : index
    %c0_147 = arith.constant 0 : index
    %330 = vector.load %arg18[%c0_145, %c0_146, %c0_147] : memref<1x8x128xf32, #tpu.memory_space<vmem>>, vector<1x8x128xf32>
    %331 = vector.shape_cast %330 : vector<1x8x128xf32> to vector<8x128xf32>
    %332 = vector.shape_cast %329 : vector<8x128xf32> to vector<1x8x128xf32>
    tpu.vector_store %arg18[%c0_145, %c0_146, %c0_147], %332 {strides = array<i32>} : memref<1x8x128xf32, #tpu.memory_space<vmem>>, vector<1x8x128xf32>,
    return
  }
  func.func @transform_0(%arg0: i32) -> (i32, i32, i32) {
    %c0_i32 = arith.constant 0 : i32
    %c0_i32_0 = arith.constant 0 : i32
    %c0_i32_1 = arith.constant 0 : i32
    return %arg0, %c0_i32, %c0_i32_0 : i32, i32, i32
  }
  func.func @transform_1(%arg0: i32) -> (i32, i32) {
    %c0_i32 = arith.constant 0 : i32
    %c0_i32_0 = arith.constant 0 : i32
    %c0_i32_1 = arith.constant 0 : i32
    return %c0_i32, %c0_i32_0 : i32, i32
  }
  func.func @transform_2(%arg0: i32) -> (i32, i32) {
    %c0_i32 = arith.constant 0 : i32
    %c0_i32_0 = arith.constant 0 : i32
    %c0_i32_1 = arith.constant 0 : i32
    return %c0_i32, %c0_i32_0 : i32, i32
  }
  func.func @transform_3(%arg0: i32) -> (i32, i32, i32) {
    %c0_i32 = arith.constant 0 : i32
    %c0_i32_0 = arith.constant 0 : i32
    %c0_i32_1 = arith.constant 0 : i32
    %c0_i32_2 = arith.constant 0 : i32
    return %c0_i32, %c0_i32_0, %c0_i32_1 : i32, i32, i32
  }
  func.func @transform_4(%arg0: i32) -> (i32, i32, i32) {
    %c0_i32 = arith.constant 0 : i32
    %c0_i32_0 = arith.constant 0 : i32
    %c0_i32_1 = arith.constant 0 : i32
    %c0_i32_2 = arith.constant 0 : i32
    return %c0_i32, %c0_i32_0, %c0_i32_1 : i32, i32, i32
  }
  func.func @transform_5(%arg0: i32) -> (i32, i32, i32) {
    %c0_i32 = arith.constant 0 : i32
    %c0_i32_0 = arith.constant 0 : i32
    %c0_i32_1 = arith.constant 0 : i32
    %c0_i32_2 = arith.constant 0 : i32
    return %c0_i32, %c0_i32_0, %c0_i32_1 : i32, i32, i32
  }
  func.func @transform_6(%arg0: i32) -> (i32, i32, i32) {
    %c0_i32 = arith.constant 0 : i32
    %c0_i32_0 = arith.constant 0 : i32
    %c0_i32_1 = arith.constant 0 : i32
    %c0_i32_2 = arith.constant 0 : i32
    return %c0_i32, %c0_i32_0, %c0_i32_1 : i32, i32, i32
  }
  func.func @transform_7(%arg0: i32) -> (i32, i32, i32) {
    %c0_i32 = arith.constant 0 : i32
    %c0_i32_0 = arith.constant 0 : i32
    %c0_i32_1 = arith.constant 0 : i32
    %c0_i32_2 = arith.constant 0 : i32
    return %c0_i32, %c0_i32_0, %c0_i32_1 : i32, i32, i32
  }
  func.func @transform_8(%arg0: i32) -> (i32, i32, i32) {
    %c0_i32 = arith.constant 0 : i32
    %c0_i32_0 = arith.constant 0 : i32
    %c0_i32_1 = arith.constant 0 : i32
    %c0_i32_2 = arith.constant 0 : i32
    return %c0_i32, %c0_i32_0, %c0_i32_1 : i32, i32, i32
  }
  func.func @transform_9(%arg0: i32) -> (i32, i32, i32) {
    %c0_i32 = arith.constant 0 : i32
    %c0_i32_0 = arith.constant 0 : i32
    %c0_i32_1 = arith.constant 0 : i32
    %c0_i32_2 = arith.constant 0 : i32
    return %c0_i32, %c0_i32_0, %c0_i32_1 : i32, i32, i32
  }
  func.func @transform_10(%arg0: i32) -> (i32, i32, i32) {
    %c0_i32 = arith.constant 0 : i32
    %c0_i32_0 = arith.constant 0 : i32
    %c0_i32_1 = arith.constant 0 : i32
    %c0_i32_2 = arith.constant 0 : i32
    return %c0_i32, %c0_i32_0, %c0_i32_1 : i32, i32, i32
  }
  func.func @transform_11(%arg0: i32) -> (i32, i32, i32) {
    %c0_i32 = arith.constant 0 : i32
    %c0_i32_0 = arith.constant 0 : i32
    %c0_i32_1 = arith.constant 0 : i32
    %c0_i32_2 = arith.constant 0 : i32
    return %c0_i32, %c0_i32_0, %c0_i32_1 : i32, i32, i32
  }
  func.func @transform_12(%arg0: i32) -> (i32, i32, i32) {
    %c0_i32 = arith.constant 0 : i32
    %c0_i32_0 = arith.constant 0 : i32
    %c0_i32_1 = arith.constant 0 : i32
    %c0_i32_2 = arith.constant 0 : i32
    return %c0_i32, %c0_i32_0, %c0_i32_1 : i32, i32, i32
  }
  func.func @transform_13(%arg0: i32) -> (i32, i32, i32) {
    %c0_i32 = arith.constant 0 : i32
    %c0_i32_0 = arith.constant 0 : i32
    %c0_i32_1 = arith.constant 0 : i32
    %c0_i32_2 = arith.constant 0 : i32
    return %c0_i32, %c0_i32_0, %c0_i32_1 : i32, i32, i32
  }
  func.func @transform_14(%arg0: i32) -> (i32, i32, i32) {
    %c0_i32 = arith.constant 0 : i32
    %c0_i32_0 = arith.constant 0 : i32
    %c0_i32_1 = arith.constant 0 : i32
    %c0_i32_2 = arith.constant 0 : i32
    return %c0_i32, %c0_i32_0, %c0_i32_1 : i32, i32, i32
  }
  func.func @transform_15(%arg0: i32) -> (i32, i32) {
    %c0_i32 = arith.constant 0 : i32
    %c0_i32_0 = arith.constant 0 : i32
    %c0_i32_1 = arith.constant 0 : i32
    return %c0_i32, %c0_i32_0 : i32, i32
  }
  func.func @transform_16(%arg0: i32) -> (i32, i32) {
    %c0_i32 = arith.constant 0 : i32
    %c0_i32_0 = arith.constant 0 : i32
    %c0_i32_1 = arith.constant 0 : i32
    return %c0_i32, %c0_i32_0 : i32, i32
  }
  func.func @transform_17(%arg0: i32) -> (i32, i32, i32) {
    %c0_i32 = arith.constant 0 : i32
    %c0_i32_0 = arith.constant 0 : i32
    %c0_i32_1 = arith.constant 0 : i32
    return %arg0, %c0_i32, %c0_i32_0 : i32, i32, i32
  }
}

</mosaic_0001>

<bundles_post_ra>
// kernel: vit_forward.1
= control target key start
LH: loop header
LB: loop body
LE: loop exit
PB: predicated region body
PF: predicated region fallthrough
CT: control target
= control target key end

     0   :  { %s2060_s24 = smov 0   ;;  %s2354_s0 = inlined_call_operand.vmem [shape: bf16[2,8,192], index: 0, kind: input, shape index: {}]   ;;  %s2355_s1 = inlined_call_operand.vmem [shape: f32[8,32], index: 1, kind: input, shape index: {}]   ;;  %s2356_s2 = inlined_call_operand.vmem [shape: bf16[192,32], index: 2, kind: input, shape index: {}]   ;;  %s2357_s3 = inlined_call_operand.vmem [shape: f32[2,1,32], index: 3, kind: input, shape index: {}]   ;;  %s2358_s4 = inlined_call_operand.vmem [shape: f32[2,1,32], index: 4, kind: input, shape index: {}]   ;;  %s2359_s5 = inlined_call_operand.vmem [shape: bf16[2,32,96], index: 5, kind: input, shape index: {}]   ;;  %s2360_s6 = inlined_call_operand.vmem [shape: f32[2,1,96], index: 6, kind: input, shape index: {}]   ;;  %s2361_s7 = inlined_call_operand.vmem [shape: bf16[2,32,32], index: 7, kind: input, shape index: {}]   ;;  %s2362_s8 = inlined_call_operand.vmem [shape: f32[2,1,32], index: 8, kind: input, shape index: {}]   ;;  %s2363_s9 = inlined_call_operand.vmem [shape: f32[2,1,32], index: 9, kind: input, shape index: {}]   ;;  %s2364_s10 = inlined_call_operand.vmem [shape: f32[2,1,32], index: 10, kind: input, shape index: {}]   ;;  %s2365_s11 = inlined_call_operand.vmem [shape: bf16[2,32,128], index: 11, kind: input, shape index: {}]   ;;  %s2366_s12 = inlined_call_operand.vmem [shape: f32[2,1,128], index: 12, kind: input, shape index: {}]   ;;  %s2367_s13 = inlined_call_operand.vmem [shape: bf16[2,128,32], index: 13, kind: input, shape index: {}]   ;;  %s2368_s14 = inlined_call_operand.vmem [shape: f32[2,1,32], index: 14, kind: input, shape index: {}]   ;;  %s2369_s15 = inlined_call_operand.vmem [shape: f32[1,32], index: 15, kind: input, shape index: {}]   ;;  %s2370_s16 = inlined_call_operand.vmem [shape: f32[1,32], index: 16, kind: input, shape index: {}]   ;;  %s2371_s17 = inlined_call_operand.vmem [shape: f32[2,8,128], index: 17, kind: output, shape index: {}]  }
   0x1   :  { %2376 = sst [smem:[#allocation2_spill]] %s2354_s0 }
   0x2   :  { %2377 = sst [smem:[#allocation3_spill]] %s2355_s1 }
   0x3 LB: > { %s1626_s25 = sadd.s32 4294967295, %s1960_s24   ;;  %p1630_p0 = scmp.ge.s32.totalorder %s1960_s24, 1  ;;  %s1960_s24 = sphi %s2060_s24, %s27_s24  }
   0x4   : > { %p487_p1 = scmp.lt.s32.totalorder %s1960_s24, 3 }
   0x6   : > { %p488_p2 = pnand %p1630_p0, %p487_p1 }
   0x7   : > { %p538_p3 = scmp.lt.s32.totalorder (!%p488_p2), %s1626_s25, 1  ;;  %s2378_s28 = sld [smem:[#allocation2_spill]] (!%p488_p2) }
   0x8   : > { %491 = sbr.rel (%p488_p2) target bundleno = 4213 (0x1075), region = 88  ;;  %s2379_s18 = sld [smem:[#allocation3_spill]] (!%p488_p2) }
   0x9   : > { %s1963_s30 = smov (!%p488_p2), 112   ;;  %s1965_s19 = smov (!%p488_p2), 80  }
   0xa   : > { %s2374_s1 = smov (!%p488_p2), 48   ;;  %s2375_s20 = smov (!%p488_p2), 64  }
   0xb   : > { %s2373_s26 = smov (!%p488_p2), 16  }
   0xd   : > { %v1855_v0 = vld [vmem:[%s2356_s2 + $0x38] sm:$0xff]  ;;  %v1854_v2 = vld [vmem:[%s2356_s2 + $0x30] sm:$0xff]  ;;  %s2385_s25 = smov (!%p538_p3, %s1626_s25), 1  ;;  %v1853_v4 = vld [vmem:[%s2356_s2 + $0x28] sm:$0xff]  ;;  %vm652_vm0 = vcmask 523264   ;;  %vm688_vm1 = vcmask 261120  }
   0xe   : > { %v1859_v1 = vld [vmem:[%s2356_s2 + $0x58] sm:$0xff]  ;;  %656 = vmatpush.bf16.msra.mxu0 %v1855_v0  ;;  %v1858_v3 = vld [vmem:[%s2356_s2 + $0x50] sm:$0xff]  ;;  %s2372_s21 = sshll.u32 %s2385_s25, 3  ;;  %v1857_v5 = vld [vmem:[%s2356_s2 + $0x48] sm:$0xff]  ;;  %v1962_v25 = vmov 32.0   ;;  %vm767_vm6 = vcmask 130048  }
   0xf   : > { %673 = vmatpush.bf16.msra.mxu1 %v1859_v1  ;;  %s542_s29 = scalar_lea.vmem %s2378_s28, %s2372_s21  ;;  %v1852_v7 = vld [vmem:[%s2356_s2 + $0x20] sm:$0xff]  ;;  %v1851_v10 = vld [vmem:[%s2356_s2 + $0x18] sm:$0xff]  ;;  %v1850_v12 = vld [vmem:[%s2356_s2 + $0x10] sm:$0xff]  ;;  %1922 = vrcp.f32 %v1962_v25  ;;  %v682_v1 = vlaneseq  ;;  %vm789_vm8 = vcmask 64512   ;;  %vm820_vm13 = vcmask 1043456   ;;  %s2382_s28 = smov 16  }
  0x10   : > { %v548_v6 = vld [vmem:[%s542_s29] sm:$0xff]  ;;  %v1849_v13 = vld [vmem:[%s2356_s2 + $0x8] sm:$0xff] }
  0x11   : > { %v576_v8 = vunpack.c.h.b16 %v548_v6  ;;  %v1856_v9 = vld [vmem:[%s2356_s2 + $0x40] sm:$0xff]  ;;  %v575_v14 = vunpack.c.l.b16 %v548_v6  ;;  %v1861_v37 = vld [vmem:[%s2359_s5 + $0x8] sm:$0xff] }
  0x12   : > { %657 = vmatpush.bf16.msra.mxu0 %v1854_v2  ;;  %v1848_v15 = vld [vmem:[%s2356_s2] sm:$0xff]  ;;  %756 = vmatpush.bf16.msra.mxu2 %v1861_v37  ;;  %v683_v2 = vand.u32 127, %v682_v1 }
  0x13   : > { %674 = vmatpush.bf16.msra.mxu1 %v1858_v3  ;;  %v578_v11 = vpack.c.b16 %v576_v8, %v576_v8  ;;  %v577_v16 = vpack.c.b16 %v575_v14, %v575_v14  ;;  %v573_v19 = vld [vmem:[%s2379_s18] sm:$0xff]  ;;  %s1964_s18 = smov 96  }
  0x14   : > { %v1860_v38 = vld [vmem:[%s2359_s5] sm:$0xff]  ;;  %vm684_vm7 = vcmp.lt.s32.totalorder %v683_v2, 5 }
  0x15   : > { %v1923_v26 = vpop.eup %1922  ;;  %v1904_v48 = vld [vmem:[%s2357_s3] ss:$0 sm:$0xff] }
  0x16   : > { %658 = vmatpush.bf16.msra.mxu0 %v1853_v4  ;;  %v693_v27 = vmul.f32 32.0, %v1923_v26  ;;  %vm697_vm2 = vweird.f32 %v1923_v26  ;;  %757 = vmatpush.bf16.msra.mxu2 %v1860_v38  ;;  %v1905_v51 = vld [vmem:[%s2358_s4] ss:$0 sm:$0xff]  ;;  %v1966_v4 = vmov -1e+30  }
  0x17   : > { %675 = vmatpush.bf16.msra.mxu1 %v1857_v5  ;;  %v1906_v55 = vld [vmem:[%s2360_s6] ss:$0 sm:$0xff]  ;;  %v2148_v5 = vsel %vm684_vm7, 0.0, %v1966_v4 }
  0x18   : > { %v694_v28 = vsub.f32 1.0, %v693_v27  ;;  %v1907_v2 = vld [vmem:[%s2362_s8] ss:$0 sm:$0xff] }
  0x1a   : > { %659 = vmatpush.bf16.msra.mxu0 %v1852_v7  ;;  %v695_v29 = vmul.f32 %v1923_v26, %v694_v28 }
  0x1b   : > { %676 = vmatpush.bf16.msra.mxu1 %v1856_v9 }
  0x1c   : > { %v696_v30 = vadd.f32 %v1923_v26, %v695_v29 }
  0x1e   : > { %660 = vmatpush.bf16.msra.mxu0 %v1851_v10  ;;  %1682 = vmatmul.msk.bf16.vlgmr.msra.gmra.mxu1 %vm652_vm0, %v578_v11  ;;  %v2119_v31 = vsel %vm697_vm2, %v1923_v26, %v696_v30 }
  0x22   : > { %661 = vmatpush.bf16.msra.mxu0 %v1850_v12 }
  0x26   : > { %662 = vmatpush.bf16.msra.mxu0 %v1849_v13 }
  0x2a   : > { %663 = vmatpush.bf16.msra.mxu0 %v1848_v15 }
  0x2d   : > { %664 = vmatmul.bf16.vlgmr.msra.gmra.mxu0 %v577_v16 }
  0x9b   : > { %v678_v17 = vpop.f32.mrf.mxu1 }
  0xa3   : > { %v680_v18 = vpop.f32.mrf.mxu1 }
  0xaa   : > { %v665_v20 = vpop.f32.mrf.mxu0 }
  0xab   : > { %v666_v21 = vadd.f32 %v665_v20, %v573_v19 }
  0xad   : > { %v2115_v22 = vadd.f32 %v678_v17, %v666_v21 }
  0xaf   : > { %v689_v23 = vsel %vm688_vm1, %v2115_v22, 0.0 }
  0xb0   : > { %690 = vadd.xlane.f32.xlu0 %v689_v23 }
  0xb2   : > { %v667_v24 = vpop.f32.mrf.mxu0 }
 0x123   : > { %v691_v32 = vpop.xlane.xlu0 %690 }
 0x124   : > { %v699_v33 = vmul.f32 %v2119_v31, %v691_v32 }
 0x126   : > { %v700_v34 = vsub.f32 %v2115_v22, %v699_v33 }
 0x128   : > { %v701_v35 = vmul.f32 %v700_v34, %v700_v34 }
 0x12a   : > { %v702_v36 = vsel %vm688_vm1, %v701_v35, 0.0 }
 0x12b   : > { %703 = vadd.xlane.f32.xlu0 %v702_v36 }
 0x19e   : > { %v704_v39 = vpop.xlane.xlu0 %703 }
 0x19f   : > { %v705_v40 = vmul.f32 %v704_v39, %v2119_v31 }
 0x1a1   : > { %v706_v41 = vadd.f32 1e-12, %v705_v40 }
 0x1a3   : > { %1924 = vrsqrt.f32 %v706_v41  ;;  %vm713_vm4 = vweird.f32 %v706_v41 }
 0x1a9   : > { %v1925_v42 = vpop.eup %1924 }
 0x1aa   : > { %v708_v43 = vmul.f32 %v1925_v42, %v706_v41  ;;  %vm714_vm3 = vweird.f32 %v1925_v42 }
 0x1ab   : > { %vm715_vm5 = vmor %vm713_vm4, %vm714_vm3 }
 0x1ac   : > { %v709_v44 = vmul.f32 %v1925_v42, %v708_v43 }
 0x1ae   : > { %v710_v45 = vmul.f32 0.5, %v709_v44 }
 0x1b0   : > { %v711_v46 = vsub.f32 1.5, %v710_v45 }
 0x1b2   : > { %v712_v47 = vmul.f32 %v1925_v42, %v711_v46 }
 0x1b4   : > { %v716_v49 = vsel %vm715_vm5, %v1925_v42, %v712_v47 }
 0x1b5   : > { %v717_v50 = vmul.f32 %v716_v49, %v700_v34 }
 0x1b7   : > { %v721_v52 = vmul.f32 %v1904_v48, %v717_v50 }
 0x1b9   : > { %v725_v53 = vadd.f32 %v1905_v51, %v721_v52 }
 0x1bb   : > { %v726_v54 = vpack.c.bf16 %v725_v53, %v725_v53 }
 0x1bd   : > { %1691 = vmatmul.msk.bf16.vlgmr.msra.gmra.mxu2 %vm688_vm1, %v726_v54 }
 0x240   : > { %v759_v56 = vpop.f32.mrf.mxu2 }
 0x241   : > { %v760_v57 = vadd.f32 %v1906_v55, %v759_v56 }
 0x243   : > { %v763_v58 = vpack.c.bf16 %v760_v57, %v760_v57  ;;  %v1863_v57 = vld [vmem:[%s2361_s7 + $0x8] sm:$0xff] }
 0x245   : > { %837 = vrot.lane.b32.xlu2 %v763_v58, %s1963_s30  ;;  %765 = vrot.lane.b32.xlu1 %v763_v58, %s1964_s18 }
 0x248   : > { %v761_v59 = vpop.f32.mrf.mxu2 }
 0x24d   : > { %839 = vrot.lane.b32.xlu1 %v763_v58, %s1965_s19 }
 0x29f   : > { %v838_v0 = vpop.permute.xlu2 %837 }
 0x2b7   : > { %v766_v60 = vpop.permute.xlu1 %765 }
 0x2b8   : > { %v772_v61 = vsel %vm767_vm6, %v766_v60, 0 }
 0x2b9   : > { %781 = vmatpush.bf16.xpose.msra.mxu3 %v772_v61 }
 0x2bf   : > { %v840_v62 = vpop.permute.xlu1 %839 }
 0x2c0   : > { %1692 = vmatmul.msk.bf16.vlgmr.msra.gmra.mxu3 %vm767_vm6, %v763_v58  ;;  %v845_v63 = vsel %vm767_vm6, %v840_v62, 0  ;;  %v1862_v62 = vld [vmem:[%s2361_s7] sm:$0xff] }
 0x2c1   : > { %854 = vmatpush.bf16.xpose.msrb.mxu3 %v845_v63 }
 0x2d0   : > { %1694 = vmatmul.msk.bf16.vlgmr.msrb.gmra.mxu3 %vm767_vm6, %v838_v0 }
 0x343   : > { %v783_v3 = vpop.f32.mrf.mxu3 }
 0x344   : > { %v787_v6 = vmul.f32 0.25, %v783_v3 }
 0x346   : > { %v788_v7 = vadd.f32 %v787_v6, %v2148_v5 }
 0x348   : > { %v790_v8 = vsel %vm789_vm8, %v788_v7, -inf }
 0x349   : > { %791 = vmax.xlane.f32.xlu2 %v790_v8 }
 0x34b   : > { %v785_v9 = vpop.f32.mrf.mxu3 }
 0x353   : > { %v856_v10 = vpop.f32.mrf.mxu3 }
 0x354   : > { %v860_v11 = vmul.f32 0.25, %v856_v10 }
 0x356   : > { %v861_v12 = vadd.f32 %v860_v11, %v2148_v5 }
 0x358   : > { %v862_v13 = vsel %vm789_vm8, %v861_v12, -inf }
 0x359   : > { %863 = vmax.xlane.f32.xlu0 %v862_v13 }
 0x35b   : > { %v858_v14 = vpop.f32.mrf.mxu3 }
 0x35c   : > { %v1865_v14 = vld [vmem:[%s2365_s11 + $0x8] sm:$0xff] }
 0x35d   : > { %1013 = vmatpush.bf16.msra.mxu3 %v1865_v14  ;;  %v1912_v14 = vld [vmem:[%s2357_s3 + $0x1] ss:$0 sm:$0xff] }
 0x361   : > { %887 = vrot.lane.b32.xlu2 %v763_v58, %s2374_s1 }
 0x3bc   : > { %v792_v15 = vpop.xlane.xlu2 %791 }
 0x3bd   : > { %v793_v16 = vsub.f32 %v788_v7, %v792_v15  ;;  %v1873_v15 = vld [vmem:[%s2367_s13 + $0x38] sm:$0xff] }
 0x3be   : > { %1098 = vmatpush.bf16.msrb.mxu0 %v1873_v15 }
 0x3bf   : > { %v794_v17 = vmul.f32 1.442695, %v793_v16 }
 0x3c1   : > { %1926 = vpow2.f32 %v794_v17 }
 0x3c4   : > { %v888_v42 = vpop.permute.xlu2 %887 }
 0x3c5   : > { %v893_v47 = vsel %vm820_vm13, %v888_v42, 0 }
 0x3c7   : > { %v1927_v18 = vpop.eup %1926 }
 0x3c8   : > { %v796_v19 = vsel %vm789_vm8, %v1927_v18, 0.0 }
 0x3c9   : > { %797 = vadd.xlane.f32.xlu1 %v796_v19 }
 0x3cc   : > { %v864_v20 = vpop.xlane.xlu0 %863 }
 0x3cd   : > { %v865_v21 = vsub.f32 %v861_v12, %v864_v20 }
 0x3cf   : > { %v866_v23 = vmul.f32 1.442695, %v865_v21 }
 0x3d1   : > { %1928 = vpow2.f32 %v866_v23 }
 0x3d7   : > { %v1929_v24 = vpop.eup %1928 }
 0x3d8   : > { %v868_v25 = vsel %vm789_vm8, %v1929_v24, 0.0 }
 0x3d9   : > { %869 = vadd.xlane.f32.xlu0 %v868_v25 }
 0x3ed   : > { %815 = vrot.lane.b32.xlu0 %v763_v58, %s2375_s20 }
 0x43c   : > { %v798_v26 = vpop.xlane.xlu1 %797 }
 0x43d   : > { %1930 = vrcp.f32 %v798_v26  ;;  %v810_v35 = vand.u32 2147483648, %v798_v26  ;;  %vm804_vm10 = vweird.f32 %v798_v26  ;;  %v808_v36 = vand.u32 2147483647, %v798_v26 }
 0x43f   : > { %v811_v39 = vor.u32 1.1754944e-38, %v810_v35  ;;  %vm809_vm12 = vcmp.eq.f32.partialorder %v808_v36, 8.507059e+37  ;;  %v1871_v35 = vld [vmem:[%s2367_s13 + $0x28] sm:$0xff]  ;;  %v1870_v36 = vld [vmem:[%s2367_s13 + $0x20] sm:$0xff] }
 0x443   : > { %v1931_v27 = vpop.eup %1930 }
 0x444   : > { %v800_v28 = vmul.f32 %v1931_v27, %v798_v26  ;;  %vm805_vm9 = vweird.f32 %v1931_v27  ;;  %v1908_v26 = vld [vmem:[%s2363_s9] ss:$0 sm:$0xff] }
 0x445   : > { %vm806_vm11 = vmor %vm804_vm10, %vm805_vm9 }
 0x446   : > { %v801_v29 = vsub.f32 1.0, %v800_v28 }
 0x448   : > { %v802_v32 = vmul.f32 %v1931_v27, %v801_v29  ;;  %v1909_v29 = vld [vmem:[%s2364_s10] ss:$0 sm:$0xff] }
 0x44a   : > { %v803_v33 = vadd.f32 %v1931_v27, %v802_v32 }
 0x44c   : > { %v870_v30 = vpop.xlane.xlu0 %869  ;;  %v807_v38 = vsel %vm806_vm11, %v1931_v27, %v803_v33 }
 0x44d   : > { %1932 = vrcp.f32 %v870_v30  ;;  %v812_v40 = vsel %vm809_vm12, %v811_v39, %v807_v38  ;;  %v882_v50 = vand.u32 2147483648, %v870_v30  ;;  %vm876_vm15 = vweird.f32 %v870_v30  ;;  %v1868_v38 = vld [vmem:[%s2367_s13 + $0x10] sm:$0xff]  ;;  %v1867_v39 = vld [vmem:[%s2367_s13 + $0x8] sm:$0xff] }
 0x44e   : > { %v813_v43 = vmul.f32 %v1927_v18, %v812_v40  ;;  %v880_v51 = vand.u32 2147483647, %v870_v30  ;;  %v1866_v40 = vld [vmem:[%s2367_s13] sm:$0xff] }
 0x44f   : > { %v883_v53 = vor.u32 1.1754944e-38, %v882_v50 }
 0x450   : > { %v814_v48 = vpack.c.bf16 %v813_v43, %v813_v43  ;;  %vm881_vm2 = vcmp.eq.f32.partialorder %v880_v51, 8.507059e+37 }
 0x453   : > { %v1933_v34 = vpop.eup %1932 }
 0x454   : > { %v872_v37 = vmul.f32 %v1933_v34, %v870_v30  ;;  %vm877_vm14 = vweird.f32 %v1933_v34 }
 0x455   : > { %vm878_vm0 = vmor %vm876_vm15, %vm877_vm14 }
 0x456   : > { %v873_v41 = vsub.f32 1.0, %v872_v37  ;;  %v1869_v37 = vld [vmem:[%s2367_s13 + $0x18] sm:$0xff] }
 0x458   : > { %v874_v45 = vmul.f32 %v1933_v34, %v873_v41  ;;  %v1910_v41 = vld [vmem:[%s2366_s12] ss:$0 sm:$0xff] }
 0x45a   : > { %v875_v49 = vadd.f32 %v1933_v34, %v874_v45 }
 0x45c   : > { %v879_v52 = vsel %vm878_vm0, %v1933_v34, %v875_v49  ;;  %v1872_v34 = vld [vmem:[%s2367_s13 + $0x30] sm:$0xff] }
 0x45d   : > { %v884_v54 = vsel %vm881_vm2, %v883_v53, %v879_v52  ;;  %1099 = vmatpush.bf16.msrb.mxu0 %v1872_v34 }
 0x45e   : > { %v885_v55 = vmul.f32 %v1929_v24, %v884_v54 }
 0x45f   : > { %v816_v44 = vpop.permute.xlu0 %815 }
 0x460   : > { %v822_v46 = vsel %vm820_vm13, %v816_v44, 0  ;;  %v886_v56 = vpack.c.bf16 %v885_v55, %v885_v55  ;;  %v1911_v55 = vld [vmem:[%s2368_s14] ss:$0 sm:$0xff] }
 0x461   : > { %831 = vmatpush.bf16.msrb.mxu2 %v822_v46  ;;  %1100 = vmatpush.bf16.msrb.mxu0 %v1871_v35 }
 0x464   : > { %1693 = vmatmul.msk.bf16.vlgmr.msrb.gmra.mxu2 %vm789_vm8, %v814_v48 }
 0x465   : > { %902 = vmatpush.bf16.msra.mxu2 %v893_v47  ;;  %1101 = vmatpush.bf16.msrb.mxu0 %v1870_v36 }
 0x469   : > { %943 = vmatpush.bf16.msrb.mxu2 %v1863_v57  ;;  %1102 = vmatpush.bf16.msrb.mxu0 %v1869_v37 }
 0x46d   : > { %944 = vmatpush.bf16.msrb.mxu2 %v1862_v62  ;;  %1103 = vmatpush.bf16.msrb.mxu0 %v1868_v38 }
 0x471   : > { %1104 = vmatpush.bf16.msrb.mxu0 %v1867_v39 }
 0x474   : > { %1695 = vmatmul.msk.bf16.vlgmr.msra.gmra.mxu2 %vm789_vm8, %v886_v56 }
 0x475   : > { %1105 = vmatpush.bf16.msrb.mxu0 %v1866_v40 }
 0x4e7   : > { %v833_v58 = vpop.f32.mrf.mxu2 }
 0x4ef   : > { %v835_v59 = vpop.f32.mrf.mxu2 }
 0x4f7   : > { %v904_v60 = vpop.f32.mrf.mxu2 }
 0x4f8   : > { %909 = vrot.lane.b32.xlu0 %v904_v60, %s2373_s26 }
 0x4ff   : > { %v906_v61 = vpop.f32.mrf.mxu2 }
 0x56a   : > { %v910_v63 = vpop.permute.xlu0 %909 }
 0x56b   : > { %v912_v0 = vsel %vm767_vm6, %v833_v58, %v910_v63 }
 0x56c   : > { %v913_v1 = vpack.c.bf16 %v912_v0, %v912_v0 }
 0x56e   : > { %1704 = vmatmul.msk.bf16.vlgmr.msrb.gmra.mxu2 %vm688_vm1, %v913_v1 }
 0x5f1   : > { %v946_v3 = vpop.f32.mrf.mxu2 }
 0x5f2   : > { %v947_v4 = vadd.f32 %v1907_v2, %v946_v3  ;;  %v1875_v2 = vld [vmem:[%s2359_s5 + $0x18] sm:$0xff]  ;;  %v1874_v3 = vld [vmem:[%s2359_s5 + $0x10] sm:$0xff] }
 0x5f3   : > { %1178 = vmatpush.bf16.msrb.mxu1 %v1875_v2 }
 0x5f4   : > { %v2175_v6 = vadd.f32 %v947_v4, %v2115_v22  ;;  %v1864_v22 = vld [vmem:[%s2365_s11] sm:$0xff] }
 0x5f5   : > { %1014 = vmatpush.bf16.msra.mxu3 %v1864_v22 }
 0x5f6   : > { %v953_v7 = vsel %vm688_vm1, %v2175_v6, 0.0 }
 0x5f7   : > { %954 = vadd.xlane.f32.xlu1 %v953_v7  ;;  %1179 = vmatpush.bf16.msrb.mxu1 %v1874_v3 }
 0x5f9   : > { %v948_v8 = vpop.f32.mrf.mxu2 }
 0x66a   : > { %v955_v9 = vpop.xlane.xlu1 %954 }
 0x66b   : > { %v956_v10 = vmul.f32 %v955_v9, %v2119_v31 }
 0x66d   : > { %v957_v11 = vsub.f32 %v2175_v6, %v956_v10 }
 0x66f   : > { %v958_v12 = vmul.f32 %v957_v11, %v957_v11 }
 0x671   : > { %v959_v13 = vsel %vm688_vm1, %v958_v12, 0.0 }
 0x672   : > { %960 = vadd.xlane.f32.xlu0 %v959_v13 }
 0x6e5   : > { %v961_v16 = vpop.xlane.xlu0 %960 }
 0x6e6   : > { %v962_v17 = vmul.f32 %v961_v16, %v2119_v31  ;;  %v1913_v16 = vld [vmem:[%s2358_s4 + $0x1] ss:$0 sm:$0xff] }
 0x6e8   : > { %v963_v18 = vadd.f32 1e-12, %v962_v17 }
 0x6ea   : > { %1934 = vrsqrt.f32 %v963_v18  ;;  %vm970_vm4 = vweird.f32 %v963_v18 }
 0x6f0   : > { %v1935_v19 = vpop.eup %1934 }
 0x6f1   : > { %v965_v20 = vmul.f32 %v1935_v19, %v963_v18  ;;  %vm971_vm3 = vweird.f32 %v1935_v19 }
 0x6f2   : > { %vm972_vm5 = vmor %vm970_vm4, %vm971_vm3 }
 0x6f3   : > { %v966_v21 = vmul.f32 %v1935_v19, %v965_v20  ;;  %v1914_v20 = vld [vmem:[%s2360_s6 + $0x1] ss:$0 sm:$0xff] }
 0x6f5   : > { %v967_v23 = vmul.f32 0.5, %v966_v21 }
 0x6f7   : > { %v968_v24 = vsub.f32 1.5, %v967_v23 }
 0x6f9   : > { %v969_v25 = vmul.f32 %v1935_v19, %v968_v24 }
 0x6fb   : > { %v973_v27 = vsel %vm972_vm5, %v1935_v19, %v969_v25 }
 0x6fc   : > { %v974_v28 = vmul.f32 %v973_v27, %v957_v11 }
 0x6fe   : > { %v978_v30 = vmul.f32 %v1908_v26, %v974_v28 }
 0x700   : > { %v982_v32 = vadd.f32 %v1909_v29, %v978_v30 }
 0x702   : > { %v983_v33 = vpack.c.bf16 %v982_v32, %v982_v32 }
 0x704   : > { %1713 = vmatmul.msk.bf16.vlgmr.msra.gmra.mxu3 %vm688_vm1, %v983_v33 }
 0x787   : > { %v1016_v42 = vpop.f32.mrf.mxu3 }
 0x788   : > { %v1017_v43 = vadd.f32 %v1910_v41, %v1016_v42 }
 0x78a   : > { %v1020_v44 = vmul.f32 %v1017_v43, %v1017_v43 }
 0x78c   : > { %v1021_v45 = vmul.f32 %v1020_v44, %v1017_v43 }
 0x78e   : > { %v1022_v46 = vmul.f32 0.044715, %v1021_v45 }
 0x78f   : > { %v1018_v47 = vpop.f32.mrf.mxu3 }
 0x790   : > { %v1023_v48 = vadd.f32 %v1022_v46, %v1017_v43 }
 0x792   : > { %v1024_v49 = vmul.f32 0.7978846, %v1023_v48 }
 0x794   : > { %1936 = vtanh.f32 %v1024_v49 }
 0x79a   : > { %v1937_v50 = vpop.eup %1936 }
 0x79b   : > { %v1026_v51 = vadd.f32 1.0, %v1937_v50 }
 0x79d   : > { %v1027_v52 = vmul.f32 0.5, %v1026_v51 }
 0x79f   : > { %v1028_v53 = vmul.f32 %v1027_v52, %v1017_v43 }
 0x7a1   : > { %v1029_v54 = vpack.c.bf16 %v1028_v53, %v1028_v53 }
 0x7a3   : > { %1106 = vmatmul.bf16.vlgmr.msrb.gmra.mxu0 %v1029_v54 }
 0x820   : > { %v1107_v56 = vpop.f32.mrf.mxu0 }
 0x821   : > { %v1108_v57 = vadd.f32 %v1911_v55, %v1107_v56 }
 0x823   : > { %v2227_v58 = vadd.f32 %v1108_v57, %v2175_v6 }
 0x825   : > { %v1116_v59 = vsel %vm688_vm1, %v2227_v58, 0.0 }
 0x826   : > { %1117 = vadd.xlane.f32.xlu1 %v1116_v59 }
 0x828   : > { %v1109_v60 = vpop.f32.mrf.mxu0 }
 0x899   : > { %v1118_v61 = vpop.xlane.xlu1 %1117 }
 0x89a   : > { %v1119_v62 = vmul.f32 %v1118_v61, %v2119_v31 }
 0x89c   : > { %v1120_v63 = vsub.f32 %v2227_v58, %v1119_v62 }
 0x89e   : > { %v1121_v0 = vmul.f32 %v1120_v63, %v1120_v63 }
 0x8a0   : > { %v1122_v1 = vsel %vm688_vm1, %v1121_v0, 0.0 }
 0x8a1   : > { %1123 = vadd.xlane.f32.xlu2 %v1122_v1 }
 0x914   : > { %v1124_v4 = vpop.xlane.xlu2 %1123 }
 0x915   : > { %v1125_v6 = vmul.f32 %v1124_v4, %v2119_v31 }
 0x917   : > { %v1126_v7 = vadd.f32 1e-12, %v1125_v6 }
 0x919   : > { %1938 = vrsqrt.f32 %v1126_v7  ;;  %vm1133_vm9 = vweird.f32 %v1126_v7 }
 0x91f   : > { %v1939_v8 = vpop.eup %1938 }
 0x920   : > { %v1128_v9 = vmul.f32 %v1939_v8, %v1126_v7  ;;  %vm1134_vm7 = vweird.f32 %v1939_v8 }
 0x921   : > { %vm1135_vm10 = vmor %vm1133_vm9, %vm1134_vm7 }
 0x922   : > { %v1129_v10 = vmul.f32 %v1939_v8, %v1128_v9 }
 0x924   : > { %v1130_v11 = vmul.f32 0.5, %v1129_v10 }
 0x926   : > { %v1131_v12 = vsub.f32 1.5, %v1130_v11 }
 0x928   : > { %v1132_v13 = vmul.f32 %v1939_v8, %v1131_v12 }
 0x92a   : > { %v1136_v22 = vsel %vm1135_vm10, %v1939_v8, %v1132_v13 }
 0x92b   : > { %v1137_v15 = vmul.f32 %v1136_v22, %v1120_v63 }
 0x92d   : > { %v1141_v17 = vmul.f32 %v1912_v14, %v1137_v15 }
 0x92f   : > { %v1145_v18 = vadd.f32 %v1913_v16, %v1141_v17 }
 0x931   : > { %v1146_v19 = vpack.c.bf16 %v1145_v18, %v1145_v18  ;;  %v1877_v18 = vld [vmem:[%s2361_s7 + $0x18] sm:$0xff] }
 0x933   : > { %1761 = vmatmul.msk.bf16.vlgmr.msrb.gmra.mxu1 %vm688_vm1, %v1146_v19 }
 0x9b0   : > { %v1181_v21 = vpop.f32.mrf.mxu1 }
 0x9b1   : > { %v1182_v23 = vadd.f32 %v1914_v20, %v1181_v21 }
 0x9b3   : > { %v1185_v24 = vpack.c.bf16 %v1182_v23, %v1182_v23 }
 0x9b5   : > { %1187 = vrot.lane.b32.xlu0 %v1185_v24, %s1964_s18  ;;  %1258 = vrot.lane.b32.xlu1 %v1185_v24, %s1965_s19  ;;  %s2381_s18 = smov 48   ;;  %s2383_s19 = sshll.u32 %s2385_s25, 3 }
 0x9b6   : > { %s546_s29 = scalar_lea.vmem %s2371_s17, %s2383_s19 }
 0x9b8   : > { %v1183_v25 = vpop.f32.mrf.mxu1 }
 0x9bd   : > { %1256 = vrot.lane.b32.xlu1 %v1185_v24, %s1963_s30  ;;  %s2380_s30 = smov 64  }
 0xa27   : > { %v1188_v26 = vpop.permute.xlu0 %1187  ;;  %v1259_v27 = vpop.permute.xlu1 %1258 }
 0xa28   : > { %v1193_v28 = vsel %vm767_vm6, %v1188_v26, 0  ;;  %v1264_v29 = vsel %vm767_vm6, %v1259_v27, 0 }
 0xa29   : > { %1202 = vmatpush.bf16.xpose.msra.mxu2 %v1193_v28  ;;  %1273 = vmatpush.bf16.xpose.msra.mxu1 %v1264_v29  ;;  %v1915_v28 = vld [vmem:[%s2362_s8 + $0x1] ss:$0 sm:$0xff] }
 0xa2f   : > { %v1257_v30 = vpop.permute.xlu1 %1256 }
 0xa30   : > { %1762 = vmatmul.msk.bf16.vlgmr.msra.gmra.mxu2 %vm767_vm6, %v1185_v24  ;;  %1764 = vmatmul.msk.bf16.vlgmr.msra.gmra.mxu1 %vm767_vm6, %v1257_v30 }
 0xaad   : > { %v1275_v32 = vpop.f32.mrf.mxu1 }
 0xaae   : > { %v1279_v33 = vmul.f32 0.25, %v1275_v32 }
 0xab0   : > { %v1280_v34 = vadd.f32 %v1279_v33, %v2148_v5 }
 0xab2   : > { %v1281_v35 = vsel %vm789_vm8, %v1280_v34, -inf }
 0xab3   : > { %v1204_v36 = vpop.f32.mrf.mxu2  ;;  %1282 = vmax.xlane.f32.xlu1 %v1281_v35 }
 0xab4   : > { %v1208_v37 = vmul.f32 0.25, %v1204_v36 }
 0xab5   : > { %v1277_v38 = vpop.f32.mrf.mxu1 }
 0xab6   : > { %v1209_v39 = vadd.f32 %v1208_v37, %v2148_v5 }
 0xab8   : > { %v1210_v40 = vsel %vm789_vm8, %v1209_v39, -inf }
 0xab9   : > { %1211 = vmax.xlane.f32.xlu2 %v1210_v40  ;;  %v1879_v40 = vld [vmem:[%s2365_s11 + $0x18] sm:$0xff] }
 0xaba   : > { %1438 = vmatpush.bf16.msra.mxu0 %v1879_v40 }
 0xabb   : > { %v1206_v41 = vpop.f32.mrf.mxu2 }
 0xabc   : > { %v1887_v41 = vld [vmem:[%s2367_s13 + $0x78] sm:$0xff] }
 0xabd   : > { %1525 = vmatpush.bf16.msrb.mxu1 %v1887_v41 }
 0xacc   : > { %1235 = vrot.lane.b32.xlu1 %v1185_v24, %s2380_s30 }
 0xad1   : > { %1306 = vrot.lane.b32.xlu2 %v1185_v24, %s2381_s18  ;;  %v1876_v24 = vld [vmem:[%s2361_s7 + $0x10] sm:$0xff] }
 0xb26   : > { %v1283_v42 = vpop.xlane.xlu1 %1282 }
 0xb27   : > { %v1284_v43 = vsub.f32 %v1280_v34, %v1283_v42 }
 0xb29   : > { %v1285_v44 = vmul.f32 1.442695, %v1284_v43 }
 0xb2b   : > { %1940 = vpow2.f32 %v1285_v44 }
 0xb2c   : > { %v1212_v45 = vpop.xlane.xlu2 %1211 }
 0xb2d   : > { %v1213_v46 = vsub.f32 %v1209_v39, %v1212_v45 }
 0xb2f   : > { %v1214_v47 = vmul.f32 1.442695, %v1213_v46 }
 0xb31   : > { %v1941_v48 = vpop.eup %1940  ;;  %1942 = vpow2.f32 %v1214_v47 }
 0xb32   : > { %v1287_v49 = vsel %vm789_vm8, %v1941_v48, 0.0 }
 0xb33   : > { %1288 = vadd.xlane.f32.xlu0 %v1287_v49 }
 0xb34   : > { %v1307_v5 = vpop.permute.xlu2 %1306 }
 0xb35   : > { %v1312_v50 = vsel %vm820_vm13, %v1307_v5, 0 }
 0xb36   : > { %1321 = vmatpush.bf16.msrb.mxu2 %v1312_v50  ;;  %v1916_v50 = vld [vmem:[%s2363_s9 + $0x1] ss:$0 sm:$0xff] }
 0xb37   : > { %v1943_v51 = vpop.eup %1942 }
 0xb38   : > { %v1216_v52 = vsel %vm789_vm8, %v1943_v51, 0.0 }
 0xb39   : > { %1217 = vadd.xlane.f32.xlu2 %v1216_v52 }
 0xb3e   : > { %v1236_v53 = vpop.permute.xlu1 %1235 }
 0xb3f   : > { %v1241_v54 = vsel %vm820_vm13, %v1236_v53, 0  ;;  %v1917_v53 = vld [vmem:[%s2364_s10 + $0x1] ss:$0 sm:$0xff] }
 0xb40   : > { %1250 = vmatpush.bf16.msrb.mxu3 %v1241_v54 }
 0xb44   : > { %1364 = vmatpush.bf16.msra.mxu3 %v1877_v18 }
 0xb48   : > { %1365 = vmatpush.bf16.msra.mxu3 %v1876_v24 }
 0xba6   : > { %v1289_v55 = vpop.xlane.xlu0 %1288 }
 0xba7   : > { %1944 = vrcp.f32 %v1289_v55  ;;  %v1301_v61 = vand.u32 2147483648, %v1289_v55  ;;  %v1299_v63 = vand.u32 2147483647, %v1289_v55  ;;  %vm1295_vm12 = vweird.f32 %v1289_v55 }
 0xba9   : > { %v1302_v3 = vor.u32 1.1754944e-38, %v1301_v61  ;;  %vm1300_vm13 = vcmp.eq.f32.partialorder %v1299_v63, 8.507059e+37  ;;  %v1883_v61 = vld [vmem:[%s2367_s13 + $0x58] sm:$0xff]  ;;  %v1881_v63 = vld [vmem:[%s2367_s13 + $0x48] sm:$0xff] }
 0xbac   : > { %v1218_v56 = vpop.xlane.xlu2 %1217 }
 0xbad   : > { %v1945_v57 = vpop.eup %1944  ;;  %1946 = vrcp.f32 %v1218_v56  ;;  %v1230_v8 = vand.u32 2147483648, %v1218_v56  ;;  %v1228_v11 = vand.u32 2147483647, %v1218_v56  ;;  %vm1224_vm0 = vweird.f32 %v1218_v56 }
 0xbae   : > { %v1291_v59 = vmul.f32 %v1945_v57, %v1289_v55  ;;  %vm1296_vm11 = vweird.f32 %v1945_v57 }
 0xbaf   : > { %vm1297_vm14 = vmor %vm1295_vm12, %vm1296_vm11  ;;  %v1231_v14 = vor.u32 1.1754944e-38, %v1230_v8  ;;  %vm1229_vm3 = vcmp.eq.f32.partialorder %v1228_v11, 8.507059e+37 }
 0xbb0   : > { %v1292_v60 = vsub.f32 1.0, %v1291_v59  ;;  %v1885_v59 = vld [vmem:[%s2367_s13 + $0x68] sm:$0xff] }
 0xbb2   : > { %v1293_v62 = vmul.f32 %v1945_v57, %v1292_v60  ;;  %v1884_v60 = vld [vmem:[%s2367_s13 + $0x60] sm:$0xff] }
 0xbb3   : > { %v1947_v0 = vpop.eup %1946 }
 0xbb4   : > { %v1294_v1 = vadd.f32 %v1945_v57, %v1293_v62  ;;  %v1220_v2 = vmul.f32 %v1947_v0, %v1218_v56  ;;  %vm1225_vm15 = vweird.f32 %v1947_v0  ;;  %v1882_v62 = vld [vmem:[%s2367_s13 + $0x50] sm:$0xff] }
 0xbb5   : > { %vm1226_vm2 = vmor %vm1224_vm0, %vm1225_vm15 }
 0xbb6   : > { %v1298_v4 = vsel %vm1297_vm14, %v1945_v57, %v1294_v1  ;;  %v1221_v6 = vsub.f32 1.0, %v1220_v2  ;;  %v1886_v57 = vld [vmem:[%s2367_s13 + $0x70] sm:$0xff]  ;;  %v1918_v1 = vld [vmem:[%s2366_s12 + $0x1] ss:$0 sm:$0xff] }
 0xbb7   : > { %v1303_v7 = vsel %vm1300_vm13, %v1302_v3, %v1298_v4  ;;  %1526 = vmatpush.bf16.msrb.mxu1 %v1886_v57 }
 0xbb8   : > { %v1304_v9 = vmul.f32 %v1941_v48, %v1303_v7  ;;  %v1222_v10 = vmul.f32 %v1947_v0, %v1221_v6 }
 0xbba   : > { %v1223_v12 = vadd.f32 %v1947_v0, %v1222_v10  ;;  %v1305_v13 = vpack.c.bf16 %v1304_v9, %v1304_v9 }
 0xbbb   : > { %1527 = vmatpush.bf16.msrb.mxu1 %v1885_v59 }
 0xbbc   : > { %v1227_v22 = vsel %vm1226_vm2, %v1947_v0, %v1223_v12  ;;  %1765 = vmatmul.msk.bf16.vlgmr.msrb.gmra.mxu2 %vm789_vm8, %v1305_v13  ;;  %v1880_v0 = vld [vmem:[%s2367_s13 + $0x40] sm:$0xff] }
 0xbbd   : > { %v1232_v15 = vsel %vm1229_vm3, %v1231_v14, %v1227_v22 }
 0xbbe   : > { %v1233_v16 = vmul.f32 %v1943_v51, %v1232_v15  ;;  %v1919_v15 = vld [vmem:[%s2368_s14 + $0x1] ss:$0 sm:$0xff] }
 0xbbf   : > { %1528 = vmatpush.bf16.msrb.mxu1 %v1884_v60 }
 0xbc0   : > { %v1234_v17 = vpack.c.bf16 %v1233_v16, %v1233_v16 }
 0xbc2   : > { %1763 = vmatmul.msk.bf16.vlgmr.msrb.gmra.mxu3 %vm789_vm8, %v1234_v17 }
 0xbc3   : > { %1529 = vmatpush.bf16.msrb.mxu1 %v1883_v61 }
 0xbc7   : > { %1530 = vmatpush.bf16.msrb.mxu1 %v1882_v62 }
 0xbcb   : > { %1531 = vmatpush.bf16.msrb.mxu1 %v1881_v63 }
 0xbcf   : > { %1532 = vmatpush.bf16.msrb.mxu1 %v1880_v0 }
 0xc3f   : > { %v1323_v19 = vpop.f32.mrf.mxu2 }
 0xc40   : > { %1328 = vrot.lane.b32.xlu0 %v1323_v19, %s2382_s28 }
 0xc45   : > { %v1252_v20 = vpop.f32.mrf.mxu3 }
 0xc47   : > { %v1325_v21 = vpop.f32.mrf.mxu2 }
 0xc4d   : > { %v1254_v23 = vpop.f32.mrf.mxu3 }
 0xcb2   : > { %v1329_v25 = vpop.permute.xlu0 %1328 }
 0xcb3   : > { %v1331_v26 = vsel %vm767_vm6, %v1252_v20, %v1329_v25 }
 0xcb4   : > { %v1332_v27 = vpack.c.bf16 %v1331_v26, %v1331_v26 }
 0xcb6   : > { %1779 = vmatmul.msk.bf16.vlgmr.msra.gmra.mxu3 %vm688_vm1, %v1332_v27 }
 0xd39   : > { %v1367_v29 = vpop.f32.mrf.mxu3 }
 0xd3a   : > { %v1368_v30 = vadd.f32 %v1915_v28, %v1367_v29 }
 0xd3c   : > { %v2283_v32 = vadd.f32 %v1368_v30, %v2227_v58  ;;  %v1878_v58 = vld [vmem:[%s2365_s11 + $0x10] sm:$0xff] }
 0xd3d   : > { %1439 = vmatpush.bf16.msra.mxu0 %v1878_v58 }
 0xd3e   : > { %v1376_v33 = vsel %vm688_vm1, %v2283_v32, 0.0 }
 0xd3f   : > { %1377 = vadd.xlane.f32.xlu1 %v1376_v33 }
 0xd41   : > { %v1369_v34 = vpop.f32.mrf.mxu3 }
 0xdb2   : > { %v1378_v35 = vpop.xlane.xlu1 %1377 }
 0xdb3   : > { %v1379_v36 = vmul.f32 %v1378_v35, %v2119_v31 }
 0xdb5   : > { %v1380_v37 = vsub.f32 %v2283_v32, %v1379_v36 }
 0xdb7   : > { %v1381_v38 = vmul.f32 %v1380_v37, %v1380_v37 }
 0xdb9   : > { %v1382_v39 = vsel %vm688_vm1, %v1381_v38, 0.0 }
 0xdba   : > { %1383 = vadd.xlane.f32.xlu0 %v1382_v39 }
 0xe2d   : > { %v1384_v42 = vpop.xlane.xlu0 %1383 }
 0xe2e   : > { %v1385_v43 = vmul.f32 %v1384_v42, %v2119_v31 }
 0xe30   : > { %v1386_v44 = vadd.f32 1e-12, %v1385_v43 }
 0xe32   : > { %1948 = vrsqrt.f32 %v1386_v44  ;;  %vm1393_vm8 = vweird.f32 %v1386_v44 }
 0xe38   : > { %v1949_v45 = vpop.eup %1948 }
 0xe39   : > { %v1388_v46 = vmul.f32 %v1949_v45, %v1386_v44  ;;  %vm1394_vm6 = vweird.f32 %v1949_v45 }
 0xe3a   : > { %vm1395_vm4 = vmor %vm1393_vm8, %vm1394_vm6 }
 0xe3b   : > { %v1389_v47 = vmul.f32 %v1949_v45, %v1388_v46 }
 0xe3d   : > { %v1390_v48 = vmul.f32 0.5, %v1389_v47 }
 0xe3f   : > { %v1391_v49 = vsub.f32 1.5, %v1390_v48 }
 0xe41   : > { %v1392_v5 = vmul.f32 %v1949_v45, %v1391_v49 }
 0xe43   : > { %v1396_v51 = vsel %vm1395_vm4, %v1949_v45, %v1392_v5 }
 0xe44   : > { %v1397_v52 = vmul.f32 %v1396_v51, %v1380_v37  ;;  %v1920_v37 = vld [vmem:[%s2369_s15] ss:$0 sm:$0xff] }
 0xe46   : > { %v1401_v54 = vmul.f32 %v1916_v50, %v1397_v52 }
 0xe48   : > { %v1405_v55 = vadd.f32 %v1917_v53, %v1401_v54 }
 0xe4a   : > { %v1406_v56 = vpack.c.bf16 %v1405_v55, %v1405_v55 }
 0xe4c   : > { %1795 = vmatmul.msk.bf16.vlgmr.msra.gmra.mxu0 %vm688_vm1, %v1406_v56 }
 0xec9   : > { %v1441_v2 = vpop.f32.mrf.mxu0 }
 0xeca   : > { %v1442_v3 = vadd.f32 %v1918_v1, %v1441_v2 }
 0xecc   : > { %v1445_v4 = vmul.f32 %v1442_v3, %v1442_v3 }
 0xece   : > { %v1446_v6 = vmul.f32 %v1445_v4, %v1442_v3 }
 0xed0   : > { %v1447_v7 = vmul.f32 0.044715, %v1446_v6 }
 0xed1   : > { %v1443_v8 = vpop.f32.mrf.mxu0 }
 0xed2   : > { %v1448_v9 = vadd.f32 %v1447_v7, %v1442_v3 }
 0xed4   : > { %v1449_v10 = vmul.f32 0.7978846, %v1448_v9 }
 0xed6   : > { %1950 = vtanh.f32 %v1449_v10 }
 0xedc   : > { %v1951_v11 = vpop.eup %1950 }
 0xedd   : > { %v1451_v12 = vadd.f32 1.0, %v1951_v11 }
 0xedf   : > { %v1452_v13 = vmul.f32 0.5, %v1451_v12 }
 0xee1   : > { %v1453_v14 = vmul.f32 %v1452_v13, %v1442_v3 }
 0xee3   : > { %v1454_v22 = vpack.c.bf16 %v1453_v14, %v1453_v14 }
 0xee5   : > { %1533 = vmatmul.bf16.vlgmr.msrb.gmra.mxu1 %v1454_v22 }
 0xf62   : > { %v1534_v16 = vpop.f32.mrf.mxu1 }
 0xf63   : > { %v1535_v17 = vadd.f32 %v1919_v15, %v1534_v16 }
 0xf65   : > { %v1538_v18 = vadd.f32 %v1535_v17, %v2283_v32 }
 0xf67   : > { %v1541_v19 = vsel %vm688_vm1, %v1538_v18, 0.0 }
 0xf68   : > { %1542 = vadd.xlane.f32.xlu2 %v1541_v19 }
 0xf6a   : > { %v1536_v20 = vpop.f32.mrf.mxu1 }
 0xfdb   : > { %v1543_v21 = vpop.xlane.xlu2 %1542 }
 0xfdc   : > { %v1544_v23 = vmul.f32 %v1543_v21, %v2119_v31 }
 0xfde   : > { %v1545_v24 = vsub.f32 %v1538_v18, %v1544_v23 }
 0xfe0   : > { %v1546_v25 = vmul.f32 %v1545_v24, %v1545_v24 }
 0xfe2   : > { %v1547_v26 = vsel %vm688_vm1, %v1546_v25, 0.0 }
 0xfe3   : > { %1548 = vadd.xlane.f32.xlu2 %v1547_v26 }
0x1056   : > { %v1549_v27 = vpop.xlane.xlu2 %1548 }
0x1057   : > { %v1550_v28 = vmul.f32 %v1549_v27, %v2119_v31  ;;  %v1921_v31 = vld [vmem:[%s2370_s16] ss:$0 sm:$0xff] }
0x1059   : > { %v1551_v29 = vadd.f32 1e-12, %v1550_v28 }
0x105b   : > { %1952 = vrsqrt.f32 %v1551_v29  ;;  %vm1558_vm7 = vweird.f32 %v1551_v29 }
0x1061   : > { %v1953_v30 = vpop.eup %1952 }
0x1062   : > { %v1553_v32 = vmul.f32 %v1953_v30, %v1551_v29  ;;  %vm1559_vm5 = vweird.f32 %v1953_v30 }
0x1063   : > { %vm1560_vm9 = vmor %vm1558_vm7, %vm1559_vm5 }
0x1064   : > { %v1554_v33 = vmul.f32 %v1953_v30, %v1553_v32 }
0x1066   : > { %v1555_v34 = vmul.f32 0.5, %v1554_v33 }
0x1068   : > { %v1556_v35 = vsub.f32 1.5, %v1555_v34 }
0x106a   : > { %v1557_v36 = vmul.f32 %v1953_v30, %v1556_v35 }
0x106c   : > { %v1561_v38 = vsel %vm1560_vm9, %v1953_v30, %v1557_v36 }
0x106d   : > { %v1562_v39 = vmul.f32 %v1561_v38, %v1545_v24 }
0x106f   : > { %v1566_v40 = vmul.f32 %v1920_v37, %v1562_v39 }
0x1071   : > { %v1570_v58 = vadd.f32 %v1921_v31, %v1566_v40 }
0x1073   : > { %v1571_v41 = vsel %vm688_vm1, %v1570_v58, 0.0 }
0x1074   : > { %1572 = vst [vmem:[%s546_s29] sm:$0xff] %v1571_v41 }
0x1075 PF: > { %s27_s24 = sadd.s32 1, %s1960_s24  }
0x1076   : > { %p24_p4 = scmp.ge.s32.totalorder %s27_s24, 4  }
0x1078   :  { %26 = sbr.rel (!%p24_p4) target bundleno = 3 (0x3), region = 130 }

</bundles_post_ra>
